<compile_context>
chip_gen: v7x
topology: tpu7x:2x2x1
jax: 0.10.0
libtpu: 0.0.40
codegen_flags: <defaults>
</compile_context>

<pallas_src>
import functools

import jax
import jax.numpy as jnp
import numpy as np
from jax.experimental import pallas as pl
from jax.experimental.pallas import tpu as pltpu

NEG_SLOPE = 0.01  # nn.LeakyReLU default negative_slope


def _upsample_matrix(L):
    """(L, 2L) matrix U with (x @ U) == Upsample(scale_factor=2, mode='linear',
    align_corners=False)(x) along the last axis (PyTorch convention):
        up[2p]   = 0.25*x[max(p-1,0)] + 0.75*x[p]
        up[2p+1] = 0.75*x[p]          + 0.25*x[min(p+1,L-1)]
    Built host-side with numpy and passed to the kernel as a constant VMEM input."""
    U = np.zeros((L, 2 * L), np.float32)
    for p in range(L):
        U[p, 2 * p] += 0.75
        U[max(p - 1, 0), 2 * p] += 0.25
        U[p, 2 * p + 1] += 0.75
        U[min(p + 1, L - 1), 2 * p + 1] += 0.25
    return U


def decoder_kernel(x_ref, *refs, n_block, ksize):
    # x_ref : (1, R, L0)                R = Bt*C rows, batch-major / channel-minor
    # refs  : U_0..U_{n_block-1}        (L_b, 2*L_b) upsample matrices (one per block)
    #         m_ref  (n_block, K, R, R) I_Bt (x) W[blk,:,:,t]   (channel mix, block-diag)
    #         b_ref  (n_block, R, 1)    conv bias expanded to packed rows
    #         p_ref  (Bt, R)            I_Bt (x) post_w         (C -> 1 conv, k=1)
    #         pb_ref (1,)  [SMEM]       post conv bias scalar
    #         o_ref  (1, Bt, Lf)        output tile
    u_refs = refs[:n_block]
    m_ref, b_ref, p_ref, pb_ref, o_ref = refs[n_block:]

    pad = ksize // 2
    x = x_ref[0].astype(jnp.float32)                                   # (R, L0)
    for blk in range(n_block):
        R, L = x.shape
        L2 = 2 * L
        # Upsample x2 (linear, align_corners=False): one small MXU matmul per block.
        u = jnp.dot(x, u_refs[blk][...], preferred_element_type=jnp.float32)   # (R, 2L)
        col = jax.lax.broadcasted_iota(jnp.int32, (R, L2), 1)
        # Conv1d(k=ksize, pad=ksize//2): taps = lane shifts (pltpu.roll, XLU) + zero mask;
        # channel mix = block-diagonal (R, R) matmul so batch rows stay stacked.
        y = None
        for t in range(ksize):
            d = t - pad
            if d == 0:
                ut = u
            elif d < 0:  # needs u[:, j + d] with zero pad on the left
                ut = jnp.where(col < -d, 0.0, pltpu.roll(u, -d, axis=1))
            else:        # needs u[:, j + d] with zero pad on the right
                ut = jnp.where(col >= L2 - d, 0.0, pltpu.roll(u, L2 - d, axis=1))
            contrib = jnp.dot(m_ref[blk, t], ut, preferred_element_type=jnp.float32)
            y = contrib if y is None else y + contrib
        y = y + b_ref[blk]                                             # (R,1) lane broadcast
        x = jnp.where(y > 0, y, NEG_SLOPE * y)                         # LeakyReLU
    # post_decoder: Conv1d(C -> 1, kernel_size=1) + Tanh, per packed batch row.
    out = jnp.dot(p_ref[...], x, preferred_element_type=jnp.float32) + pb_ref[0]  # (Bt, Lf)
    o_ref[0] = jnp.tanh(out)


def fold_decoder_zero_split(x, conv_w, conv_b, post_w, post_b):
    """x: (B, C, L0) f32; conv_w: (n_block, C, C, K); conv_b: (n_block, C);
    post_w: (1, C, 1); post_b: (1,).  Returns (B, 1, L0 * 2**n_block) f32."""
    B, C, L0 = x.shape
    n_block, _, _, K = conv_w.shape
    Lf = L0 * (2 ** n_block)

    # Pack Bt batches per grid program so Bt*C rows fill the 8 f32 sublanes (C=4 -> Bt=2).
    # (On v7x keep B/Bt >= 2 programs when B allows it so both TensorCores get work.)
    Bt = 2 if (B % 2 == 0 and 2 * C <= 8) else 1
    R = Bt * C
    nprog = B // Bt

    # Rows: batch-major, channel-minor inside each program's tile.
    xr = x.astype(jnp.float32).reshape(nprog, R, L0)

    # Host-side constants: one upsample matrix per block (length doubles each block).
    u_mats = [jnp.asarray(_upsample_matrix(L0 * (2 ** b))) for b in range(n_block)]

    # Channel-mix matrices, block-diagonal over packed batches: I_Bt (x) W[blk,:,:,t].
    eye_bt = jnp.eye(Bt, dtype=jnp.float32)
    w_t = jnp.transpose(conv_w.astype(jnp.float32), (0, 3, 1, 2))      # (n_block, K, Co, Ci)
    m_mats = jnp.einsum("ij,btkl->btikjl", eye_bt, w_t).reshape(n_block, K, R, R)
    # Conv biases expanded to packed rows (row = b*C + c -> bias = conv_b[blk, c]).
    b_rows = jnp.tile(conv_b.astype(jnp.float32), (1, Bt)).reshape(n_block, R, 1)
    # Post conv (C -> 1, k=1): I_Bt (x) post_w -> (Bt, R); its bias is a scalar in SMEM.
    pw_row = post_w.astype(jnp.float32).reshape(1, C)
    p_mat = jnp.einsum("ij,kl->ikjl", eye_bt, pw_row).reshape(Bt, R)
    pb = post_b.astype(jnp.float32).reshape(1)

    kern = functools.partial(decoder_kernel, n_block=n_block, ksize=K)
    out = pl.pallas_call(
        kern,
        out_shape=jax.ShapeDtypeStruct((nprog, Bt, Lf), jnp.float32),
        grid_spec=pltpu.PrefetchScalarGridSpec(
            num_scalar_prefetch=0,
            grid=(nprog,),
            in_specs=[pl.BlockSpec((1, R, L0), lambda i: (i, 0, 0))]
            + [pl.BlockSpec(u.shape, lambda i: (0, 0)) for u in u_mats]
            + [
                pl.BlockSpec(m_mats.shape, lambda i: (0, 0, 0, 0)),
                pl.BlockSpec(b_rows.shape, lambda i: (0, 0, 0)),
                pl.BlockSpec(p_mat.shape, lambda i: (0, 0)),
                pl.BlockSpec(memory_space=pltpu.MemorySpace.SMEM),
            ],
            out_specs=pl.BlockSpec((1, Bt, Lf), lambda i: (i, 0, 0)),
        ),
        compiler_params=pltpu.CompilerParams(dimension_semantics=("parallel",)),
    )(xr, *u_mats, m_mats, b_rows, p_mat, pb)
    return out.reshape(B, 1, Lf)


# ---------------- pure-JAX reference (for correctness check only) ----------------
def _ref_upsample_x2(x):  # x: (B, C, L), PyTorch linear upsample, align_corners=False
    left = jnp.concatenate([x[..., :1], x[..., :-1]], axis=-1)
    right = jnp.concatenate([x[..., 1:], x[..., -1:]], axis=-1)
    even = 0.25 * left + 0.75 * x
    odd = 0.75 * x + 0.25 * right
    B, C, L = x.shape
    return jnp.stack([even, odd], axis=-1).reshape(B, C, 2 * L)


def _ref_conv1d(x, w, b, pad):
    y = jax.lax.conv_general_dilated(
        x, w, window_strides=(1,), padding=[(pad, pad)],
        dimension_numbers=("NCH", "OIH", "NCH"))
    return y + b[None, :, None]


def reference(x, conv_w, conv_b, post_w, post_b):
    K = conv_w.shape[-1]
    for blk in range(conv_w.shape[0]):
        x = _ref_upsample_x2(x)
        x = _ref_conv1d(x, conv_w[blk], conv_b[blk], pad=K // 2)
        x = jnp.where(x > 0, x, NEG_SLOPE * x)
    y = _ref_conv1d(x, post_w, post_b, pad=0)
    return jnp.tanh(y)


if __name__ == "__main__":
    # Small shapes consistent with the module: (B, input_chan, input_dim), n_block upsampling blocks.
    B, C, L0, n_block, K = 2, 4, 16, 5, 3

    key = jax.random.PRNGKey(0)
    kx, kw, kb, kpw, kpb = jax.random.split(key, 5)
    x = jax.random.normal(kx, (B, C, L0), dtype=jnp.float32)
    # Conv_block.init_weights: weight ~ Normal(0, 0.01); biases small deterministic values.
    conv_w = 0.01 * jax.random.normal(kw, (n_block, C, C, K), dtype=jnp.float32)
    conv_b = 0.05 * jax.random.normal(kb, (n_block, C), dtype=jnp.float32)
    post_w = 0.01 * jax.random.normal(kpw, (1, C, 1), dtype=jnp.float32)
    post_b = 0.05 * jax.random.normal(kpb, (1,), dtype=jnp.float32)

    out = jax.block_until_ready(fold_decoder_zero_split(x, conv_w, conv_b, post_w, post_b))
    assert out.shape == (B, 1, L0 * 2 ** n_block), out.shape

    ref = jax.block_until_ready(reference(x, conv_w, conv_b, post_w, post_b))
    np.testing.assert_allclose(np.asarray(out), np.asarray(ref), rtol=1e-4, atol=1e-5)

    print("KERNEL_OK")
</pallas_src>

<mosaic_0001>
module attributes {stable_mosaic.version = 11 : i64} {
  func.func @decoder_kernel(%arg0: i32, %arg1: memref<1x8x16xf32, #tpu.memory_space<vmem>>, %arg2: memref<16x32xf32, #tpu.memory_space<vmem>>, %arg3: memref<32x64xf32, #tpu.memory_space<vmem>>, %arg4: memref<64x128xf32, #tpu.memory_space<vmem>>, %arg5: memref<128x256xf32, #tpu.memory_space<vmem>>, %arg6: memref<256x512xf32, #tpu.memory_space<vmem>>, %arg7: memref<5x3x8x8xf32, #tpu.memory_space<vmem>>, %arg8: memref<5x8x1xf32, #tpu.memory_space<vmem>>, %arg9: memref<2x8xf32, #tpu.memory_space<vmem>>, %arg10: memref<1xf32, #tpu.memory_space<smem>>, %arg11: memref<1x2x512xf32, #tpu.memory_space<vmem>>) attributes {dimension_semantics = [#tpu.dimension_semantics<parallel>], iteration_bounds = array<i64: 1>, scalar_prefetch = 0 : i64, scratch_operands = 0 : i64, tpu.core_type = #tpu.core_type<tc>, window_params = [{transform_indices = @transform_0, window_bounds = array<i64: 1, 8, 16>}, {pipeline_mode = #tpu.pipeline_mode<synchronous>, transform_indices = @transform_1, window_bounds = array<i64: 16, 32>}, {pipeline_mode = #tpu.pipeline_mode<synchronous>, transform_indices = @transform_2, window_bounds = array<i64: 32, 64>}, {pipeline_mode = #tpu.pipeline_mode<synchronous>, transform_indices = @transform_3, window_bounds = array<i64: 64, 128>}, {pipeline_mode = #tpu.pipeline_mode<synchronous>, transform_indices = @transform_4, window_bounds = array<i64: 128, 256>}, {pipeline_mode = #tpu.pipeline_mode<synchronous>, transform_indices = @transform_5, window_bounds = array<i64: 256, 512>}, {pipeline_mode = #tpu.pipeline_mode<synchronous>, transform_indices = @transform_6, window_bounds = array<i64: 5, 3, 8, 8>}, {pipeline_mode = #tpu.pipeline_mode<synchronous>, transform_indices = @transform_7, window_bounds = array<i64: 5, 8, 1>}, {pipeline_mode = #tpu.pipeline_mode<synchronous>, transform_indices = @transform_8, window_bounds = array<i64: 2, 8>}, {transform_indices = @transform_9, window_bounds = array<i64: 1>}, {transform_indices = @transform_10, window_bounds = array<i64: 1, 2, 512>}]} {
    %c0 = arith.constant 0 : index
    %c0_0 = arith.constant 0 : index
    %c0_1 = arith.constant 0 : index
    %0 = vector.load %arg1[%c0, %c0_0, %c0_1] : memref<1x8x16xf32, #tpu.memory_space<vmem>>, vector<1x8x16xf32>
    %1 = vector.shape_cast %0 : vector<1x8x16xf32> to vector<8x16xf32>
    %c0_2 = arith.constant 0 : index
    %c0_3 = arith.constant 0 : index
    %2 = vector.load %arg2[%c0_2, %c0_3] : memref<16x32xf32, #tpu.memory_space<vmem>>, vector<16x32xf32>
    %cst = arith.constant dense<0.000000e+00> : vector<8x32xf32>
    %3 = tpu.matmul %1, %2, %cst {dimension_numbers = #tpu.dot_dimension_numbers<[1], [0], [0], [1], [0, 0, 1, 1], [], []>} : vector<8x16xf32>, vector<16x32xf32>, vector<8x32xf32> -> vector<8x32xf32>
    %4 = tpu.iota {dimensions = array<i32: 1>} : vector<8x32xi32>
    %c1_i32 = arith.constant 1 : i32
    %5 = vector.broadcast %c1_i32 : i32 to vector<8x32xi32>
    %6 = arith.cmpi slt, %4, %5 : vector<8x32xi32>
    %c1_i32_4 = arith.constant 1 : i32
    %7 = tpu.dynamic_rotate %3 by %c1_i32_4 dim 1 : vector<8x32xf32>, i32 -> vector<8x32xf32>
    %cst_5 = arith.constant 0.000000e+00 : f32
    %8 = vector.broadcast %cst_5 : f32 to vector<8x32xf32>
    %9 = arith.select %6, %8, %7 : vector<8x32xi1>, vector<8x32xf32>
    %c0_6 = arith.constant 0 : index
    %c0_7 = arith.constant 0 : index
    %c0_8 = arith.constant 0 : index
    %c0_9 = arith.constant 0 : index
    %10 = vector.load %arg7[%c0_6, %c0_7, %c0_8, %c0_9] : memref<5x3x8x8xf32, #tpu.memory_space<vmem>>, vector<1x1x8x8xf32>
    %11 = vector.shape_cast %10 : vector<1x1x8x8xf32> to vector<8x8xf32>
    %cst_10 = arith.constant dense<0.000000e+00> : vector<8x32xf32>
    %12 = tpu.matmul %11, %9, %cst_10 {dimension_numbers = #tpu.dot_dimension_numbers<[1], [0], [0], [1], [0, 0, 1, 1], [], []>} : vector<8x8xf32>, vector<8x32xf32>, vector<8x32xf32> -> vector<8x32xf32>
    %c0_11 = arith.constant 0 : index
    %c1 = arith.constant 1 : index
    %c0_12 = arith.constant 0 : index
    %c0_13 = arith.constant 0 : index
    %13 = vector.load %arg7[%c0_11, %c1, %c0_12, %c0_13] : memref<5x3x8x8xf32, #tpu.memory_space<vmem>>, vector<1x1x8x8xf32>
    %14 = vector.shape_cast %13 : vector<1x1x8x8xf32> to vector<8x8xf32>
    %cst_14 = arith.constant dense<0.000000e+00> : vector<8x32xf32>
    %15 = tpu.matmul %14, %3, %cst_14 {dimension_numbers = #tpu.dot_dimension_numbers<[1], [0], [0], [1], [0, 0, 1, 1], [], []>} : vector<8x8xf32>, vector<8x32xf32>, vector<8x32xf32> -> vector<8x32xf32>
    %16 = arith.addf %12, %15 : vector<8x32xf32>
    %c31_i32 = arith.constant 31 : i32
    %17 = vector.broadcast %c31_i32 : i32 to vector<8x32xi32>
    %18 = arith.cmpi sge, %4, %17 : vector<8x32xi32>
    %c31_i32_15 = arith.constant 31 : i32
    %19 = tpu.dynamic_rotate %3 by %c31_i32_15 dim 1 : vector<8x32xf32>, i32 -> vector<8x32xf32>
    %cst_16 = arith.constant 0.000000e+00 : f32
    %20 = vector.broadcast %cst_16 : f32 to vector<8x32xf32>
    %21 = arith.select %18, %20, %19 : vector<8x32xi1>, vector<8x32xf32>
    %c0_17 = arith.constant 0 : index
    %c2 = arith.constant 2 : index
    %c0_18 = arith.constant 0 : index
    %c0_19 = arith.constant 0 : index
    %22 = vector.load %arg7[%c0_17, %c2, %c0_18, %c0_19] : memref<5x3x8x8xf32, #tpu.memory_space<vmem>>, vector<1x1x8x8xf32>
    %23 = vector.shape_cast %22 : vector<1x1x8x8xf32> to vector<8x8xf32>
    %cst_20 = arith.constant dense<0.000000e+00> : vector<8x32xf32>
    %24 = tpu.matmul %23, %21, %cst_20 {dimension_numbers = #tpu.dot_dimension_numbers<[1], [0], [0], [1], [0, 0, 1, 1], [], []>} : vector<8x8xf32>, vector<8x32xf32>, vector<8x32xf32> -> vector<8x32xf32>
    %25 = arith.addf %16, %24 : vector<8x32xf32>
    %c0_21 = arith.constant 0 : index
    %c0_22 = arith.constant 0 : index
    %c0_23 = arith.constant 0 : index
    %26 = vector.load %arg8[%c0_21, %c0_22, %c0_23] : memref<5x8x1xf32, #tpu.memory_space<vmem>>, vector<1x8x1xf32>
    %27 = vector.shape_cast %26 : vector<1x8x1xf32> to vector<8x1xf32>
    %28 = vector.broadcast %27 : vector<8x1xf32> to vector<8x32xf32>
    %29 = arith.addf %25, %28 : vector<8x32xf32>
    %cst_24 = arith.constant 0.000000e+00 : f32
    %30 = vector.broadcast %cst_24 : f32 to vector<8x32xf32>
    %31 = arith.cmpf ogt, %29, %30 : vector<8x32xf32>
    %cst_25 = arith.constant 0.00999999977 : f32
    %32 = vector.broadcast %cst_25 : f32 to vector<8x32xf32>
    %33 = arith.mulf %32, %29 : vector<8x32xf32>
    %34 = arith.select %31, %29, %33 : vector<8x32xi1>, vector<8x32xf32>
    %c0_26 = arith.constant 0 : index
    %c0_27 = arith.constant 0 : index
    %35 = vector.load %arg3[%c0_26, %c0_27] : memref<32x64xf32, #tpu.memory_space<vmem>>, vector<32x64xf32>
    %cst_28 = arith.constant dense<0.000000e+00> : vector<8x64xf32>
    %36 = tpu.matmul %34, %35, %cst_28 {dimension_numbers = #tpu.dot_dimension_numbers<[1], [0], [0], [1], [0, 0, 1, 1], [], []>} : vector<8x32xf32>, vector<32x64xf32>, vector<8x64xf32> -> vector<8x64xf32>
    %37 = tpu.iota {dimensions = array<i32: 1>} : vector<8x64xi32>
    %c1_i32_29 = arith.constant 1 : i32
    %38 = vector.broadcast %c1_i32_29 : i32 to vector<8x64xi32>
    %39 = arith.cmpi slt, %37, %38 : vector<8x64xi32>
    %c1_i32_30 = arith.constant 1 : i32
    %40 = tpu.dynamic_rotate %36 by %c1_i32_30 dim 1 : vector<8x64xf32>, i32 -> vector<8x64xf32>
    %cst_31 = arith.constant 0.000000e+00 : f32
    %41 = vector.broadcast %cst_31 : f32 to vector<8x64xf32>
    %42 = arith.select %39, %41, %40 : vector<8x64xi1>, vector<8x64xf32>
    %c1_32 = arith.constant 1 : index
    %c0_33 = arith.constant 0 : index
    %c0_34 = arith.constant 0 : index
    %c0_35 = arith.constant 0 : index
    %43 = vector.load %arg7[%c1_32, %c0_33, %c0_34, %c0_35] : memref<5x3x8x8xf32, #tpu.memory_space<vmem>>, vector<1x1x8x8xf32>
    %44 = vector.shape_cast %43 : vector<1x1x8x8xf32> to vector<8x8xf32>
    %cst_36 = arith.constant dense<0.000000e+00> : vector<8x64xf32>
    %45 = tpu.matmul %44, %42, %cst_36 {dimension_numbers = #tpu.dot_dimension_numbers<[1], [0], [0], [1], [0, 0, 1, 1], [], []>} : vector<8x8xf32>, vector<8x64xf32>, vector<8x64xf32> -> vector<8x64xf32>
    %c1_37 = arith.constant 1 : index
    %c1_38 = arith.constant 1 : index
    %c0_39 = arith.constant 0 : index
    %c0_40 = arith.constant 0 : index
    %46 = vector.load %arg7[%c1_37, %c1_38, %c0_39, %c0_40] : memref<5x3x8x8xf32, #tpu.memory_space<vmem>>, vector<1x1x8x8xf32>
    %47 = vector.shape_cast %46 : vector<1x1x8x8xf32> to vector<8x8xf32>
    %cst_41 = arith.constant dense<0.000000e+00> : vector<8x64xf32>
    %48 = tpu.matmul %47, %36, %cst_41 {dimension_numbers = #tpu.dot_dimension_numbers<[1], [0], [0], [1], [0, 0, 1, 1], [], []>} : vector<8x8xf32>, vector<8x64xf32>, vector<8x64xf32> -> vector<8x64xf32>
    %49 = arith.addf %45, %48 : vector<8x64xf32>
    %c63_i32 = arith.constant 63 : i32
    %50 = vector.broadcast %c63_i32 : i32 to vector<8x64xi32>
    %51 = arith.cmpi sge, %37, %50 : vector<8x64xi32>
    %c63_i32_42 = arith.constant 63 : i32
    %52 = tpu.dynamic_rotate %36 by %c63_i32_42 dim 1 : vector<8x64xf32>, i32 -> vector<8x64xf32>
    %cst_43 = arith.constant 0.000000e+00 : f32
    %53 = vector.broadcast %cst_43 : f32 to vector<8x64xf32>
    %54 = arith.select %51, %53, %52 : vector<8x64xi1>, vector<8x64xf32>
    %c1_44 = arith.constant 1 : index
    %c2_45 = arith.constant 2 : index
    %c0_46 = arith.constant 0 : index
    %c0_47 = arith.constant 0 : index
    %55 = vector.load %arg7[%c1_44, %c2_45, %c0_46, %c0_47] : memref<5x3x8x8xf32, #tpu.memory_space<vmem>>, vector<1x1x8x8xf32>
    %56 = vector.shape_cast %55 : vector<1x1x8x8xf32> to vector<8x8xf32>
    %cst_48 = arith.constant dense<0.000000e+00> : vector<8x64xf32>
    %57 = tpu.matmul %56, %54, %cst_48 {dimension_numbers = #tpu.dot_dimension_numbers<[1], [0], [0], [1], [0, 0, 1, 1], [], []>} : vector<8x8xf32>, vector<8x64xf32>, vector<8x64xf32> -> vector<8x64xf32>
    %58 = arith.addf %49, %57 : vector<8x64xf32>
    %c1_49 = arith.constant 1 : index
    %c0_50 = arith.constant 0 : index
    %c0_51 = arith.constant 0 : index
    %59 = vector.load %arg8[%c1_49, %c0_50, %c0_51] : memref<5x8x1xf32, #tpu.memory_space<vmem>>, vector<1x8x1xf32>
    %60 = vector.shape_cast %59 : vector<1x8x1xf32> to vector<8x1xf32>
    %61 = vector.broadcast %60 : vector<8x1xf32> to vector<8x64xf32>
    %62 = arith.addf %58, %61 : vector<8x64xf32>
    %cst_52 = arith.constant 0.000000e+00 : f32
    %63 = vector.broadcast %cst_52 : f32 to vector<8x64xf32>
    %64 = arith.cmpf ogt, %62, %63 : vector<8x64xf32>
    %cst_53 = arith.constant 0.00999999977 : f32
    %65 = vector.broadcast %cst_53 : f32 to vector<8x64xf32>
    %66 = arith.mulf %65, %62 : vector<8x64xf32>
    %67 = arith.select %64, %62, %66 : vector<8x64xi1>, vector<8x64xf32>
    %c0_54 = arith.constant 0 : index
    %c0_55 = arith.constant 0 : index
    %68 = vector.load %arg4[%c0_54, %c0_55] : memref<64x128xf32, #tpu.memory_space<vmem>>, vector<64x128xf32>
    %cst_56 = arith.constant dense<0.000000e+00> : vector<8x128xf32>
    %69 = tpu.matmul %67, %68, %cst_56 {dimension_numbers = #tpu.dot_dimension_numbers<[1], [0], [0], [1], [0, 0, 1, 1], [], []>} : vector<8x64xf32>, vector<64x128xf32>, vector<8x128xf32> -> vector<8x128xf32>
    %70 = tpu.iota {dimensions = array<i32: 1>} : vector<8x128xi32>
    %c1_i32_57 = arith.constant 1 : i32
    %71 = vector.broadcast %c1_i32_57 : i32 to vector<8x128xi32>
    %72 = arith.cmpi slt, %70, %71 : vector<8x128xi32>
    %c1_i32_58 = arith.constant 1 : i32
    %73 = tpu.dynamic_rotate %69 by %c1_i32_58 dim 1 : vector<8x128xf32>, i32 -> vector<8x128xf32>
    %cst_59 = arith.constant 0.000000e+00 : f32
    %74 = vector.broadcast %cst_59 : f32 to vector<8x128xf32>
    %75 = arith.select %72, %74, %73 : vector<8x128xi1>, vector<8x128xf32>
    %c2_60 = arith.constant 2 : index
    %c0_61 = arith.constant 0 : index
    %c0_62 = arith.constant 0 : index
    %c0_63 = arith.constant 0 : index
    %76 = vector.load %arg7[%c2_60, %c0_61, %c0_62, %c0_63] : memref<5x3x8x8xf32, #tpu.memory_space<vmem>>, vector<1x1x8x8xf32>
    %77 = vector.shape_cast %76 : vector<1x1x8x8xf32> to vector<8x8xf32>
    %cst_64 = arith.constant dense<0.000000e+00> : vector<8x128xf32>
    %78 = tpu.matmul %77, %75, %cst_64 {dimension_numbers = #tpu.dot_dimension_numbers<[1], [0], [0], [1], [0, 0, 1, 1], [], []>} : vector<8x8xf32>, vector<8x128xf32>, vector<8x128xf32> -> vector<8x128xf32>
    %c2_65 = arith.constant 2 : index
    %c1_66 = arith.constant 1 : index
    %c0_67 = arith.constant 0 : index
    %c0_68 = arith.constant 0 : index
    %79 = vector.load %arg7[%c2_65, %c1_66, %c0_67, %c0_68] : memref<5x3x8x8xf32, #tpu.memory_space<vmem>>, vector<1x1x8x8xf32>
    %80 = vector.shape_cast %79 : vector<1x1x8x8xf32> to vector<8x8xf32>
    %cst_69 = arith.constant dense<0.000000e+00> : vector<8x128xf32>
    %81 = tpu.matmul %80, %69, %cst_69 {dimension_numbers = #tpu.dot_dimension_numbers<[1], [0], [0], [1], [0, 0, 1, 1], [], []>} : vector<8x8xf32>, vector<8x128xf32>, vector<8x128xf32> -> vector<8x128xf32>
    %82 = arith.addf %78, %81 : vector<8x128xf32>
    %c127_i32 = arith.constant 127 : i32
    %83 = vector.broadcast %c127_i32 : i32 to vector<8x128xi32>
    %84 = arith.cmpi sge, %70, %83 : vector<8x128xi32>
    %c127_i32_70 = arith.constant 127 : i32
    %85 = tpu.dynamic_rotate %69 by %c127_i32_70 dim 1 : vector<8x128xf32>, i32 -> vector<8x128xf32>
    %cst_71 = arith.constant 0.000000e+00 : f32
    %86 = vector.broadcast %cst_71 : f32 to vector<8x128xf32>
    %87 = arith.select %84, %86, %85 : vector<8x128xi1>, vector<8x128xf32>
    %c2_72 = arith.constant 2 : index
    %c2_73 = arith.constant 2 : index
    %c0_74 = arith.constant 0 : index
    %c0_75 = arith.constant 0 : index
    %88 = vector.load %arg7[%c2_72, %c2_73, %c0_74, %c0_75] : memref<5x3x8x8xf32, #tpu.memory_space<vmem>>, vector<1x1x8x8xf32>
    %89 = vector.shape_cast %88 : vector<1x1x8x8xf32> to vector<8x8xf32>
    %cst_76 = arith.constant dense<0.000000e+00> : vector<8x128xf32>
    %90 = tpu.matmul %89, %87, %cst_76 {dimension_numbers = #tpu.dot_dimension_numbers<[1], [0], [0], [1], [0, 0, 1, 1], [], []>} : vector<8x8xf32>, vector<8x128xf32>, vector<8x128xf32> -> vector<8x128xf32>
    %91 = arith.addf %82, %90 : vector<8x128xf32>
    %c2_77 = arith.constant 2 : index
    %c0_78 = arith.constant 0 : index
    %c0_79 = arith.constant 0 : index
    %92 = vector.load %arg8[%c2_77, %c0_78, %c0_79] : memref<5x8x1xf32, #tpu.memory_space<vmem>>, vector<1x8x1xf32>
    %93 = vector.shape_cast %92 : vector<1x8x1xf32> to vector<8x1xf32>
    %94 = vector.broadcast %93 : vector<8x1xf32> to vector<8x128xf32>
    %95 = arith.addf %91, %94 : vector<8x128xf32>
    %cst_80 = arith.constant 0.000000e+00 : f32
    %96 = vector.broadcast %cst_80 : f32 to vector<8x128xf32>
    %97 = arith.cmpf ogt, %95, %96 : vector<8x128xf32>
    %cst_81 = arith.constant 0.00999999977 : f32
    %98 = vector.broadcast %cst_81 : f32 to vector<8x128xf32>
    %99 = arith.mulf %98, %95 : vector<8x128xf32>
    %100 = arith.select %97, %95, %99 : vector<8x128xi1>, vector<8x128xf32>
    %c0_82 = arith.constant 0 : index
    %c0_83 = arith.constant 0 : index
    %101 = vector.load %arg5[%c0_82, %c0_83] : memref<128x256xf32, #tpu.memory_space<vmem>>, vector<128x256xf32>
    %cst_84 = arith.constant dense<0.000000e+00> : vector<8x256xf32>
    %102 = tpu.matmul %100, %101, %cst_84 {dimension_numbers = #tpu.dot_dimension_numbers<[1], [0], [0], [1], [0, 0, 1, 1], [], []>} : vector<8x128xf32>, vector<128x256xf32>, vector<8x256xf32> -> vector<8x256xf32>
    %103 = tpu.iota {dimensions = array<i32: 1>} : vector<8x256xi32>
    %c1_i32_85 = arith.constant 1 : i32
    %104 = vector.broadcast %c1_i32_85 : i32 to vector<8x256xi32>
    %105 = arith.cmpi slt, %103, %104 : vector<8x256xi32>
    %c1_i32_86 = arith.constant 1 : i32
    %106 = tpu.dynamic_rotate %102 by %c1_i32_86 dim 1 : vector<8x256xf32>, i32 -> vector<8x256xf32>
    %cst_87 = arith.constant 0.000000e+00 : f32
    %107 = vector.broadcast %cst_87 : f32 to vector<8x256xf32>
    %108 = arith.select %105, %107, %106 : vector<8x256xi1>, vector<8x256xf32>
    %c3 = arith.constant 3 : index
    %c0_88 = arith.constant 0 : index
    %c0_89 = arith.constant 0 : index
    %c0_90 = arith.constant 0 : index
    %109 = vector.load %arg7[%c3, %c0_88, %c0_89, %c0_90] : memref<5x3x8x8xf32, #tpu.memory_space<vmem>>, vector<1x1x8x8xf32>
    %110 = vector.shape_cast %109 : vector<1x1x8x8xf32> to vector<8x8xf32>
    %cst_91 = arith.constant dense<0.000000e+00> : vector<8x256xf32>
    %111 = tpu.matmul %110, %108, %cst_91 {dimension_numbers = #tpu.dot_dimension_numbers<[1], [0], [0], [1], [0, 0, 1, 1], [], []>} : vector<8x8xf32>, vector<8x256xf32>, vector<8x256xf32> -> vector<8x256xf32>
    %c3_92 = arith.constant 3 : index
    %c1_93 = arith.constant 1 : index
    %c0_94 = arith.constant 0 : index
    %c0_95 = arith.constant 0 : index
    %112 = vector.load %arg7[%c3_92, %c1_93, %c0_94, %c0_95] : memref<5x3x8x8xf32, #tpu.memory_space<vmem>>, vector<1x1x8x8xf32>
    %113 = vector.shape_cast %112 : vector<1x1x8x8xf32> to vector<8x8xf32>
    %cst_96 = arith.constant dense<0.000000e+00> : vector<8x256xf32>
    %114 = tpu.matmul %113, %102, %cst_96 {dimension_numbers = #tpu.dot_dimension_numbers<[1], [0], [0], [1], [0, 0, 1, 1], [], []>} : vector<8x8xf32>, vector<8x256xf32>, vector<8x256xf32> -> vector<8x256xf32>
    %115 = arith.addf %111, %114 : vector<8x256xf32>
    %c255_i32 = arith.constant 255 : i32
    %116 = vector.broadcast %c255_i32 : i32 to vector<8x256xi32>
    %117 = arith.cmpi sge, %103, %116 : vector<8x256xi32>
    %c255_i32_97 = arith.constant 255 : i32
    %118 = tpu.dynamic_rotate %102 by %c255_i32_97 dim 1 : vector<8x256xf32>, i32 -> vector<8x256xf32>
    %cst_98 = arith.constant 0.000000e+00 : f32
    %119 = vector.broadcast %cst_98 : f32 to vector<8x256xf32>
    %120 = arith.select %117, %119, %118 : vector<8x256xi1>, vector<8x256xf32>
    %c3_99 = arith.constant 3 : index
    %c2_100 = arith.constant 2 : index
    %c0_101 = arith.constant 0 : index
    %c0_102 = arith.constant 0 : index
    %121 = vector.load %arg7[%c3_99, %c2_100, %c0_101, %c0_102] : memref<5x3x8x8xf32, #tpu.memory_space<vmem>>, vector<1x1x8x8xf32>
    %122 = vector.shape_cast %121 : vector<1x1x8x8xf32> to vector<8x8xf32>
    %cst_103 = arith.constant dense<0.000000e+00> : vector<8x256xf32>
    %123 = tpu.matmul %122, %120, %cst_103 {dimension_numbers = #tpu.dot_dimension_numbers<[1], [0], [0], [1], [0, 0, 1, 1], [], []>} : vector<8x8xf32>, vector<8x256xf32>, vector<8x256xf32> -> vector<8x256xf32>
    %124 = arith.addf %115, %123 : vector<8x256xf32>
    %c3_104 = arith.constant 3 : index
    %c0_105 = arith.constant 0 : index
    %c0_106 = arith.constant 0 : index
    %125 = vector.load %arg8[%c3_104, %c0_105, %c0_106] : memref<5x8x1xf32, #tpu.memory_space<vmem>>, vector<1x8x1xf32>
    %126 = vector.shape_cast %125 : vector<1x8x1xf32> to vector<8x1xf32>
    %127 = vector.broadcast %126 : vector<8x1xf32> to vector<8x256xf32>
    %128 = arith.addf %124, %127 : vector<8x256xf32>
    %cst_107 = arith.constant 0.000000e+00 : f32
    %129 = vector.broadcast %cst_107 : f32 to vector<8x256xf32>
    %130 = arith.cmpf ogt, %128, %129 : vector<8x256xf32>
    %cst_108 = arith.constant 0.00999999977 : f32
    %131 = vector.broadcast %cst_108 : f32 to vector<8x256xf32>
    %132 = arith.mulf %131, %128 : vector<8x256xf32>
    %133 = arith.select %130, %128, %132 : vector<8x256xi1>, vector<8x256xf32>
    %c0_109 = arith.constant 0 : index
    %c0_110 = arith.constant 0 : index
    %134 = vector.load %arg6[%c0_109, %c0_110] : memref<256x512xf32, #tpu.memory_space<vmem>>, vector<256x512xf32>
    %cst_111 = arith.constant dense<0.000000e+00> : vector<8x512xf32>
    %135 = tpu.matmul %133, %134, %cst_111 {dimension_numbers = #tpu.dot_dimension_numbers<[1], [0], [0], [1], [0, 0, 1, 1], [], []>} : vector<8x256xf32>, vector<256x512xf32>, vector<8x512xf32> -> vector<8x512xf32>
    %136 = tpu.iota {dimensions = array<i32: 1>} : vector<8x512xi32>
    %c1_i32_112 = arith.constant 1 : i32
    %137 = vector.broadcast %c1_i32_112 : i32 to vector<8x512xi32>
    %138 = arith.cmpi slt, %136, %137 : vector<8x512xi32>
    %c1_i32_113 = arith.constant 1 : i32
    %139 = tpu.dynamic_rotate %135 by %c1_i32_113 dim 1 : vector<8x512xf32>, i32 -> vector<8x512xf32>
    %cst_114 = arith.constant 0.000000e+00 : f32
    %140 = vector.broadcast %cst_114 : f32 to vector<8x512xf32>
    %141 = arith.select %138, %140, %139 : vector<8x512xi1>, vector<8x512xf32>
    %c4 = arith.constant 4 : index
    %c0_115 = arith.constant 0 : index
    %c0_116 = arith.constant 0 : index
    %c0_117 = arith.constant 0 : index
    %142 = vector.load %arg7[%c4, %c0_115, %c0_116, %c0_117] : memref<5x3x8x8xf32, #tpu.memory_space<vmem>>, vector<1x1x8x8xf32>
    %143 = vector.shape_cast %142 : vector<1x1x8x8xf32> to vector<8x8xf32>
    %cst_118 = arith.constant dense<0.000000e+00> : vector<8x512xf32>
    %144 = tpu.matmul %143, %141, %cst_118 {dimension_numbers = #tpu.dot_dimension_numbers<[1], [0], [0], [1], [0, 0, 1, 1], [], []>} : vector<8x8xf32>, vector<8x512xf32>, vector<8x512xf32> -> vector<8x512xf32>
    %c4_119 = arith.constant 4 : index
    %c1_120 = arith.constant 1 : index
    %c0_121 = arith.constant 0 : index
    %c0_122 = arith.constant 0 : index
    %145 = vector.load %arg7[%c4_119, %c1_120, %c0_121, %c0_122] : memref<5x3x8x8xf32, #tpu.memory_space<vmem>>, vector<1x1x8x8xf32>
    %146 = vector.shape_cast %145 : vector<1x1x8x8xf32> to vector<8x8xf32>
    %cst_123 = arith.constant dense<0.000000e+00> : vector<8x512xf32>
    %147 = tpu.matmul %146, %135, %cst_123 {dimension_numbers = #tpu.dot_dimension_numbers<[1], [0], [0], [1], [0, 0, 1, 1], [], []>} : vector<8x8xf32>, vector<8x512xf32>, vector<8x512xf32> -> vector<8x512xf32>
    %148 = arith.addf %144, %147 : vector<8x512xf32>
    %c511_i32 = arith.constant 511 : i32
    %149 = vector.broadcast %c511_i32 : i32 to vector<8x512xi32>
    %150 = arith.cmpi sge, %136, %149 : vector<8x512xi32>
    %c511_i32_124 = arith.constant 511 : i32
    %151 = tpu.dynamic_rotate %135 by %c511_i32_124 dim 1 : vector<8x512xf32>, i32 -> vector<8x512xf32>
    %cst_125 = arith.constant 0.000000e+00 : f32
    %152 = vector.broadcast %cst_125 : f32 to vector<8x512xf32>
    %153 = arith.select %150, %152, %151 : vector<8x512xi1>, vector<8x512xf32>
    %c4_126 = arith.constant 4 : index
    %c2_127 = arith.constant 2 : index
    %c0_128 = arith.constant 0 : index
    %c0_129 = arith.constant 0 : index
    %154 = vector.load %arg7[%c4_126, %c2_127, %c0_128, %c0_129] : memref<5x3x8x8xf32, #tpu.memory_space<vmem>>, vector<1x1x8x8xf32>
    %155 = vector.shape_cast %154 : vector<1x1x8x8xf32> to vector<8x8xf32>
    %cst_130 = arith.constant dense<0.000000e+00> : vector<8x512xf32>
    %156 = tpu.matmul %155, %153, %cst_130 {dimension_numbers = #tpu.dot_dimension_numbers<[1], [0], [0], [1], [0, 0, 1, 1], [], []>} : vector<8x8xf32>, vector<8x512xf32>, vector<8x512xf32> -> vector<8x512xf32>
    %157 = arith.addf %148, %156 : vector<8x512xf32>
    %c4_131 = arith.constant 4 : index
    %c0_132 = arith.constant 0 : index
    %c0_133 = arith.constant 0 : index
    %158 = vector.load %arg8[%c4_131, %c0_132, %c0_133] : memref<5x8x1xf32, #tpu.memory_space<vmem>>, vector<1x8x1xf32>
    %159 = vector.shape_cast %158 : vector<1x8x1xf32> to vector<8x1xf32>
    %160 = vector.broadcast %159 : vector<8x1xf32> to vector<8x512xf32>
    %161 = arith.addf %157, %160 : vector<8x512xf32>
    %cst_134 = arith.constant 0.000000e+00 : f32
    %162 = vector.broadcast %cst_134 : f32 to vector<8x512xf32>
    %163 = arith.cmpf ogt, %161, %162 : vector<8x512xf32>
    %cst_135 = arith.constant 0.00999999977 : f32
    %164 = vector.broadcast %cst_135 : f32 to vector<8x512xf32>
    %165 = arith.mulf %164, %161 : vector<8x512xf32>
    %166 = arith.select %163, %161, %165 : vector<8x512xi1>, vector<8x512xf32>
    %c0_136 = arith.constant 0 : index
    %c0_137 = arith.constant 0 : index
    %167 = vector.load %arg9[%c0_136, %c0_137] : memref<2x8xf32, #tpu.memory_space<vmem>>, vector<2x8xf32>
    %cst_138 = arith.constant dense<0.000000e+00> : vector<2x512xf32>
    %168 = tpu.matmul %167, %166, %cst_138 {dimension_numbers = #tpu.dot_dimension_numbers<[1], [0], [0], [1], [0, 0, 1, 1], [], []>} : vector<2x8xf32>, vector<8x512xf32>, vector<2x512xf32> -> vector<2x512xf32>
    %c0_139 = arith.constant 0 : index
    %169 = memref.load %arg10[%c0_139] : memref<1xf32, #tpu.memory_space<smem>>
    %170 = vector.broadcast %169 : f32 to vector<2x512xf32>
    %171 = arith.addf %168, %170 : vector<2x512xf32>
    %172 = math.tanh %171 : vector<2x512xf32>
    %c0_140 = arith.constant 0 : index
    %c0_141 = arith.constant 0 : index
    %c0_142 = arith.constant 0 : index
    %173 = vector.load %arg11[%c0_140, %c0_141, %c0_142] : memref<1x2x512xf32, #tpu.memory_space<vmem>>, vector<1x2x512xf32>
    %174 = vector.shape_cast %173 : vector<1x2x512xf32> to vector<2x512xf32>
    %175 = vector.shape_cast %172 : vector<2x512xf32> to vector<1x2x512xf32>
    tpu.vector_store %arg11[%c0_140, %c0_141, %c0_142], %175 {strides = array<i32>} : memref<1x2x512xf32, #tpu.memory_space<vmem>>, vector<1x2x512xf32>,
    return
  }
  func.func @transform_0(%arg0: i32) -> (i32, i32, i32) {
    %c0_i32 = arith.constant 0 : i32
    %c0_i32_0 = arith.constant 0 : i32
    %c0_i32_1 = arith.constant 0 : i32
    return %arg0, %c0_i32, %c0_i32_0 : i32, i32, i32
  }
  func.func @transform_1(%arg0: i32) -> (i32, i32) {
    %c0_i32 = arith.constant 0 : i32
    %c0_i32_0 = arith.constant 0 : i32
    %c0_i32_1 = arith.constant 0 : i32
    return %c0_i32, %c0_i32_0 : i32, i32
  }
  func.func @transform_2(%arg0: i32) -> (i32, i32) {
    %c0_i32 = arith.constant 0 : i32
    %c0_i32_0 = arith.constant 0 : i32
    %c0_i32_1 = arith.constant 0 : i32
    return %c0_i32, %c0_i32_0 : i32, i32
  }
  func.func @transform_3(%arg0: i32) -> (i32, i32) {
    %c0_i32 = arith.constant 0 : i32
    %c0_i32_0 = arith.constant 0 : i32
    %c0_i32_1 = arith.constant 0 : i32
    return %c0_i32, %c0_i32_0 : i32, i32
  }
  func.func @transform_4(%arg0: i32) -> (i32, i32) {
    %c0_i32 = arith.constant 0 : i32
    %c0_i32_0 = arith.constant 0 : i32
    %c0_i32_1 = arith.constant 0 : i32
    return %c0_i32, %c0_i32_0 : i32, i32
  }
  func.func @transform_5(%arg0: i32) -> (i32, i32) {
    %c0_i32 = arith.constant 0 : i32
    %c0_i32_0 = arith.constant 0 : i32
    %c0_i32_1 = arith.constant 0 : i32
    return %c0_i32, %c0_i32_0 : i32, i32
  }
  func.func @transform_6(%arg0: i32) -> (i32, i32, i32, i32) {
    %c0_i32 = arith.constant 0 : i32
    %c0_i32_0 = arith.constant 0 : i32
    %c0_i32_1 = arith.constant 0 : i32
    %c0_i32_2 = arith.constant 0 : i32
    %c0_i32_3 = arith.constant 0 : i32
    return %c0_i32, %c0_i32_0, %c0_i32_1, %c0_i32_2 : i32, i32, i32, i32
  }
  func.func @transform_7(%arg0: i32) -> (i32, i32, i32) {
    %c0_i32 = arith.constant 0 : i32
    %c0_i32_0 = arith.constant 0 : i32
    %c0_i32_1 = arith.constant 0 : i32
    %c0_i32_2 = arith.constant 0 : i32
    return %c0_i32, %c0_i32_0, %c0_i32_1 : i32, i32, i32
  }
  func.func @transform_8(%arg0: i32) -> (i32, i32) {
    %c0_i32 = arith.constant 0 : i32
    %c0_i32_0 = arith.constant 0 : i32
    %c0_i32_1 = arith.constant 0 : i32
    return %c0_i32, %c0_i32_0 : i32, i32
  }
  func.func @transform_9(%arg0: i32) -> i32 {
    %c0_i32 = arith.constant 0 : i32
    %c0_i32_0 = arith.constant 0 : i32
    return %c0_i32 : i32
  }
  func.func @transform_10(%arg0: i32) -> (i32, i32, i32) {
    %c0_i32 = arith.constant 0 : i32
    %c0_i32_0 = arith.constant 0 : i32
    %c0_i32_1 = arith.constant 0 : i32
    return %arg0, %c0_i32, %c0_i32_0 : i32, i32, i32
  }
}

</mosaic_0001>

<bundles_post_ra>
// kernel: tpu_custom_call.1
= control target key start
LH: loop header
LB: loop body
LE: loop exit
PB: predicated region body
PF: predicated region fallthrough
CT: control target
= control target key end

     0   :  { %16 = vsyncpa [#allocation4], 0  ;;  %s3260_s0 = inlined_call_operand.vmem [shape: f32[1,8,16], index: 0, kind: input, shape index: {}]   ;;  %s3261_s1 = inlined_call_operand.vmem [shape: f32[16,32], index: 1, kind: input, shape index: {}]   ;;  %s3262_s2 = inlined_call_operand.vmem [shape: f32[32,64], index: 2, kind: input, shape index: {}]   ;;  %s3263_s3 = inlined_call_operand.hbm [shape: f32[64,128], index: 3, kind: input, shape index: {}]   ;;  %s3264_s4 = inlined_call_operand.hbm [shape: f32[128,256], index: 4, kind: input, shape index: {}]   ;;  %s3265_s5 = inlined_call_operand.hbm [shape: f32[256,512], index: 5, kind: input, shape index: {}]   ;;  %s3266_s6 = inlined_call_operand.hbm [shape: f32[5,3,8,8], index: 6, kind: input, shape index: {}]   ;;  %s3267_s7 = inlined_call_operand.vmem [shape: f32[5,8,1], index: 7, kind: input, shape index: {}]   ;;  %s3268_s8 = inlined_call_operand.vmem [shape: f32[2,8], index: 8, kind: input, shape index: {}]   ;;  %s3269_s9 = inlined_call_operand.<no memory space> [shape: f32[1], index: 9, kind: input, shape index: {}]   ;;  %s3270_s10 = inlined_call_operand.hbm [shape: f32[1,2,512], index: 10, kind: output, shape index: {}]  }
   0x1   :  { %17 = vsyncpa [#allocation7], 0 }
   0x2   :  { %18 = vsyncpa [#allocation10], 0 }
   0x3   :  { %19 = vsyncpa [#allocation5], 0  ;;  %s2933_s13 = smov [#allocation6]   ;;  %s2815_s17 = scalar_lea.hbm %s3264_s4, 4096 }
   0x4   :  { %s43_s14 = sshll.u32 %s2933_s13, 4  ;;  %p2816_p0 = scmp.ne.s32.totalorder %s3264_s4, %s2815_s17  ;;  %s44_s14 = int_to_ptr.vmem [resolvable:$true] %s43_s14 }
   0x5   :  { %p2819_p1 = scmp.lt.u32.totalorder %s2815_s17, %s3264_s4 }
   0x7   :  { %p2821_p2 = pnand %p2819_p1, %p2816_p0 }
   0x9   :  { %2824 = shalt.err (!%p2821_p2)
}
   0xa   :  { %s2825_s22 = scalar_lea.vmem %s44_s14, 4096  ;;  %p2830_p4 = scmp.lt.s32.totalorder %s44_s14, %s44_s14 }
   0xb   :  { %p2826_p3 = scmp.ne.s32.totalorder %s44_s14, %s2825_s22  ;;  %p2831_p5 = scmp.lt.s32.totalorder %s2825_s22, %s2825_s22 }
   0xd   :  { %p2832_p6 = por %p2831_p5, %p2830_p4 }
   0xf   :  { %p2833_p7 = pnand %p2832_p6, %p2826_p3 }
  0x11   :  { %2836 = shalt.err (!%p2833_p7)
}
  0x12   :  { %s2934_s23 = smov 256   ;;  %s2935_s24 = smov 16  }
  0x13   :  { %49 = dma.hbm_to_vmem [thread:$0]  %s3264_s4, 4096, %s44_s14, [#allocation7], %s2934_s23, %s2934_s23, %s2935_s24  }
  0x14   :  { %s2936_s27 = smov [#allocation3]   ;;  %s2837_s11 = scalar_lea.hbm %s3263_s3, 1024 }
  0x15   :  { %s31_s28 = sshll.u32 %s2936_s27, 4  ;;  %p2838_p8 = scmp.ne.s32.totalorder %s3263_s3, %s2837_s11  ;;  %s32_s28 = int_to_ptr.vmem [resolvable:$true] %s31_s28 }
  0x16   :  { %p2841_p9 = scmp.lt.u32.totalorder %s2837_s11, %s3263_s3 }
  0x18   :  { %p2843_p10 = pnand %p2841_p9, %p2838_p8 }
  0x1a   :  { %2846 = shalt.err (!%p2843_p10)
}
  0x1b   :  { %s2847_s17 = scalar_lea.vmem %s32_s28, 1024  ;;  %p2852_p12 = scmp.lt.s32.totalorder %s32_s28, %s32_s28 }
  0x1c   :  { %p2848_p11 = scmp.ne.s32.totalorder %s32_s28, %s2847_s17  ;;  %p2853_p13 = scmp.lt.s32.totalorder %s2847_s17, %s2847_s17 }
  0x1e   :  { %p2854_p0 = por %p2853_p13, %p2852_p12 }
  0x20   :  { %p2855_p1 = pnand %p2854_p0, %p2848_p11 }
  0x22   :  { %2858 = shalt.err (!%p2855_p1)
}
  0x23   :  { %s2937_s4 = smov 128   ;;  %s2938_s14 = smov 8  }
  0x24   :  { %37 = dma.hbm_to_vmem [thread:$0]  %s3263_s3, 1024, %s32_s28, [#allocation4], %s2937_s4, %s2937_s4, %s2938_s14  }
  0x25   :  { %s2939_s20 = smov [#allocation8]   ;;  %s2859_s24 = scalar_lea.hbm %s3265_s5, 16384 }
  0x26   :  { %s55_s21 = sshll.u32 %s2939_s20, 4  ;;  %p2860_p2 = scmp.ne.s32.totalorder %s3265_s5, %s2859_s24  ;;  %s56_s21 = int_to_ptr.vmem [resolvable:$true] %s55_s21 }
  0x27   :  { %p2863_p3 = scmp.lt.u32.totalorder %s2859_s24, %s3265_s5 }
  0x29   :  { %p2865_p4 = pnand %p2863_p3, %p2860_p2 }
  0x2b   :  { %2868 = shalt.err (!%p2865_p4)
}
  0x2c   :  { %s2869_s30 = scalar_lea.vmem %s56_s21, 16384  ;;  %p2874_p6 = scmp.lt.s32.totalorder %s56_s21, %s56_s21 }
  0x2d   :  { %p2870_p5 = scmp.ne.s32.totalorder %s56_s21, %s2869_s30  ;;  %p2875_p7 = scmp.lt.s32.totalorder %s2869_s30, %s2869_s30 }
  0x2f   :  { %p2876_p8 = por %p2875_p7, %p2874_p6 }
  0x31   :  { %p2877_p9 = pnand %p2876_p8, %p2870_p5 }
  0x33   :  { %2880 = shalt.err (!%p2877_p9)
}
  0x34   :  { %s2940_s3 = smov 512   ;;  %s2941_s28 = smov 32  }
  0x35   :  { %61 = dma.hbm_to_vmem [thread:$0]  %s3265_s5, 16384, %s56_s21, [#allocation7], %s2940_s3, %s2940_s3, %s2941_s28  }
  0x36   :  { %s2942_s13 = smov [#allocation9]   ;;  %s2881_s18 = scalar_lea.hbm %s3266_s6, 1920 }
  0x37   :  { %s67_s15 = sshll.u32 %s2942_s13, 4  ;;  %p2882_p10 = scmp.ne.s32.totalorder %s3266_s6, %s2881_s18  ;;  %s68_s15 = int_to_ptr.vmem [resolvable:$true] %s67_s15 }
  0x38   :  { %p2885_p11 = scmp.lt.u32.totalorder %s2881_s18, %s3266_s6 }
  0x3a   :  { %p2887_p12 = pnand %p2885_p11, %p2882_p10 }
  0x3c   :  { %2890 = shalt.err (!%p2887_p12)
}
  0x3d   :  { %s2891_s24 = scalar_lea.vmem %s68_s15, 1920  ;;  %p2896_p0 = scmp.lt.s32.totalorder %s68_s15, %s68_s15 }
  0x3e   :  { %p2892_p13 = scmp.ne.s32.totalorder %s68_s15, %s2891_s24  ;;  %p2897_p1 = scmp.lt.s32.totalorder %s2891_s24, %s2891_s24 }
  0x40   :  { %p2898_p2 = por %p2897_p1, %p2896_p0 }
  0x42   :  { %p2899_p3 = pnand %p2898_p2, %p2892_p13 }
  0x44   :  { %2902 = shalt.err (!%p2899_p3)
}
  0x45   :  { %73 = dma.hbm_to_vmem [thread:$0]  %s3266_s6, 1920, %s68_s15, [#allocation10], %s2937_s4, %s2937_s4, %s2938_s14  }
  0x46   :  { %2925 = dma.done.wait [#allocation4], 1024  }
  0x47   :  { %2926 = vsyncadd [#allocation4], 4294966272 }
  0x48   :  { %2927 = dma.done.wait [#allocation7], 20480  }
  0x49   :  { %2928 = vsyncadd [#allocation7], 4294946816 }
  0x4a   :  { %2929 = dma.done.wait [#allocation10], 1920  }
  0x4b   :  { %2930 = vsyncadd [#allocation10], 4294965376  ;;  %v2943_v0 = vmov 0.0|0.0   ;;  %vm2944_vm0 = vmmov 0   ;;  %v2945_v1 = vmov 0.0   ;;  %v93_v2 = vld [vmem:[%s3261_s1] sm:$0xff]  ;;  %v169_v17 = vlaneseq }
  0x4c   :  { %2591 = vmatprep.subr.bf16.mxu0 %v2943_v0  ;;  %2513 = vmatprep.mubr.msk.f32.mxu0 %vm2944_vm0, %v2945_v1  ;;  %v94_v3 = vld [vmem:[%s3261_s1 + $0x8] sm:$0xff]  ;;  %v92_v5 = vld [vmem:[%s3260_s0] sm:$0xff]  ;;  %vm95_vm1 = vcmask 130048   ;;  %vm187_vm2 = vcmask 64512   ;;  %vm172_vm3 = vcmask 1047808   ;;  %v2946_v12 = vmov 0  }
  0x4d   :  { %2516 = vmatprep.subr.mxu1 %v2945_v1  ;;  %2518 = vmatprep.mubr.msk.f32.mxu1 %vm2944_vm0, %v2945_v1  ;;  %v2592_v4 = vpack.c.bf16 %v94_v3, %v93_v2  ;;  %v186_v8 = vld [vmem:[#allocation9 + $0x8] sm:$0xff]  ;;  %v415_v11 = vld [vmem:[%s3267_s7] sm:$0xff]  ;;  %s2947_s29 = smov 97   ;;  %s2948_s30 = smov 127   ;;  %v3093_v18 = vand.u32 127, %v169_v17  ;;  %v340_v22 = vld [vmem:[#allocation9 + $0x10] sm:$0xff] }
  0x4e   :  { %2805 = vset.pattern.permute.xlu0 %v2946_v12  ;;  %2806 = vset.pattern.permute.xlu1 %v2946_v12  ;;  %v184_v20 = vld [vmem:[#allocation9] sm:$0xff]  ;;  %v426_v25 = vld [vmem:[%s3262_s2 + $0x8] sm:$0xff]  ;;  %v427_v27 = vld [vmem:[%s3262_s2 + $0x10] sm:$0xff]  ;;  %vm429_vm8 = vcmask 261120   ;;  %vm503_vm9 = vcmask 1048064   ;;  %s2950_s18 = smov 65  }
  0x4f   :  { %2593 = vmatpush3.bf16.msra.mxu0 %v2592_v4  ;;  %vm171_vm4 = vcmp.lt.s32.totalorder %v3093_v18, 1  ;;  %vm2469_vm6 = vcmp.lt.s32.totalorder %v3093_v18, 31  ;;  %v425_v24 = vld [vmem:[%s3262_s2] sm:$0xff]  ;;  %v428_v28 = vld [vmem:[%s3262_s2 + $0x18] sm:$0xff]  ;;  %s2949_s2 = smov 64   ;;  %v2438_v47 = vld [vmem:[%s3267_s7 + $0x8] sm:$0xff] }
  0x50   :  { %2526 = vmatprep.subr.mxu0 %v2945_v1  ;;  %vm3098_vm5 = vmneg %vm171_vm4  ;;  %v2595_v26 = vpack.c.bf16 %v426_v25, %v425_v24  ;;  %v2598_v29 = vpack.c.bf16 %v428_v28, %v427_v27  ;;  %v518_v42 = vld [vmem:[#allocation9 + $0x20] sm:$0xff]  ;;  %v758_v51 = vld [vmem:[#allocation3 + $0x8] sm:$0xff]  ;;  %vm2470_vm10 = vcmp.lt.s32.totalorder %v3093_v18, 63  ;;  %vm765_vm12 = vcmask 523264   ;;  %s2951_s22 = smov 1  }
  0x51   :  { %v757_v50 = vld [vmem:[#allocation3] sm:$0xff]  ;;  %v516_v52 = vld [vmem:[#allocation9 + $0x18] sm:$0xff]  ;;  %v671_v53 = vld [vmem:[#allocation9 + $0x28] sm:$0xff]  ;;  %vm2471_vm13 = vcmp.lt.s32.totalorder %v3093_v18, 127 }
  0x52   :  { %2514 = vmatmul.mubr.msk.f32.vlgmr.msra.gmra.mrb[0].mxu0 %vm95_vm1, %v92_v5  ;;  %v2601_v56 = vpack.c.bf16 %v758_v51, %v757_v50  ;;  %v759_v57 = vld [vmem:[#allocation3 + $0x10] sm:$0xff]  ;;  %v760_v58 = vld [vmem:[#allocation3 + $0x18] sm:$0xff]  ;;  %v761_v60 = vld [vmem:[#allocation3 + $0x20] sm:$0xff] }
  0x53   :  { %2528 = vmatprep.mubr.msk.f32.mxu0 %vm2944_vm0, %v2945_v1  ;;  %v2604_v59 = vpack.c.bf16 %v760_v58, %v759_v57  ;;  %v762_v61 = vld [vmem:[#allocation3 + $0x28] sm:$0xff]  ;;  %v763_v63 = vld [vmem:[#allocation3 + $0x30] sm:$0xff]  ;;  %v764_v2 = vld [vmem:[#allocation3 + $0x38] sm:$0xff] }
  0x54   :  { %v2607_v62 = vpack.c.bf16 %v762_v61, %v761_v60  ;;  %v2610_v3 = vpack.c.bf16 %v764_v2, %v763_v63  ;;  %v1083_v25 = vld [vmem:[#allocation6] sm:$0xff]  ;;  %v1088_v27 = vld [vmem:[#allocation6 + $0x28] sm:$0xff]  ;;  %v1090_v28 = vld [vmem:[#allocation6 + $0x38] sm:$0xff] }
  0x55   :  { %v1099_v51 = vld [vmem:[#allocation6 + $0x80] sm:$0xff]  ;;  %v1105_v58 = vld [vmem:[#allocation6 + $0xb0] sm:$0xff]  ;;  %v1108_v60 = vld [vmem:[#allocation6 + $0xc8] sm:$0xff] }
  0x56   :  { %v1103_v57 = vld [vmem:[#allocation6 + $0xa0] sm:$0xff]  ;;  %v1110_v61 = vld [vmem:[#allocation6 + $0xd8] sm:$0xff]  ;;  %v1109_v2 = vld [vmem:[#allocation6 + $0xd0] sm:$0xff] }
  0x57   :  { %v1107_v63 = vld [vmem:[#allocation6 + $0xc0] sm:$0xff] }
 0x125   :  { %v165_v6 = vpop.f32.mrb[0].mxu0 }
 0x126   :  { %173 = vrot.lane.b32.xlu0 %v165_v6, %s2941_s28  ;;  %v2515_v7 = vpop.f32.mrb[1].mxu0  ;;  %2517 = vmatpush3.msra.mxu1 %v165_v6 }
 0x127   :  { %2521 = vmatprep.subr.mxu1 %v2945_v1  ;;  %2519 = vmatmul.mubr.msk.f32.vlgmr.msra.gmra.mrb[0].mxu1 %vm187_vm2, %v186_v8 }
 0x128   :  { %2523 = vmatprep.mubr.msk.f32.mxu1 %vm2944_vm0, %v2945_v1 }
 0x198   :  { %v174_v9 = vpop.permute.xlu0 %173 }
 0x199   :  { %v175_v10 = vsel %vm172_vm3, %v174_v9, %v165_v6 }
 0x19a   :  { %176 = vrot.lane.b32.xlu0 %v175_v10, %s2941_s28 }
 0x19e   :  { %418 = vperm.xlu0 %2805, %v415_v11  }
 0x1fa   :  { %v257_v15 = vpop.f32.mrb[0].mxu1 }
 0x1fb   :  { %v2520_v16 = vpop.f32.mrb[1].mxu1 }
 0x1fc   :  { %v2447_v16 = vld [vmem:[%s3267_s7 + $0x10] sm:$0xff] }
 0x20c   :  { %v177_v13 = vpop.permute.xlu0 %176 }
 0x20d   :  { %v178_v14 = vsel %vm172_vm3, %v177_v13, %v165_v6 }
 0x20e   :  { %180 = vrot.lane.b32.xlu1 %v178_v14, %s2947_s29 }
 0x212   :  { %335 = vrot.lane.b32.xlu1 %v178_v14, %s2948_s30  ;;  %v845_v14 = vld [vmem:[#allocation9 + $0x38] sm:$0xff] }
 0x21d   :  { %v419_v34 = vpop.permute.xlu0 %418 }
 0x280   :  { %v181_v21 = vpop.permute.xlu1 %180 }
 0x281   :  { %2522 = vmatpush3.msk.msra.mxu1 %vm3098_vm5, %v181_v21  ;;  %v1086_v21 = vld [vmem:[#allocation6 + $0x18] sm:$0xff] }
 0x282   :  { %2524 = vmatmul.mubr.msk.f32.vlgmr.msra.gmra.mrb[2].mxu1 %vm187_vm2, %v184_v20  ;;  %2594 = vmatprep.subr.bf16.mxu1 %v2943_v0  ;;  %v1084_v20 = vld [vmem:[#allocation6 + $0x8] sm:$0xff] }
 0x283   :  { %2539 = vmatprep.mubr.msk.f32.mxu1 %vm2944_vm0, %v2945_v1  ;;  %2596 = vmatpush3.bf16.msra.mxu1 %v2595_v26  ;;  %v2612_v24 = vpack.c.bf16 %v1086_v21, %v1084_v20  ;;  %v1085_v26 = vld [vmem:[#allocation6 + $0x10] sm:$0xff] }
 0x284   :  { %v336_v23 = vpop.permute.xlu1 %335  ;;  %2597 = vmatprep.subr.bf16.mxu1 %v2943_v0 }
 0x285   :  { %2527 = vmatpush3.msk.msra.mxu0 %vm2469_vm6, %v336_v23 }
 0x286   :  { %2529 = vmatmul.mubr.msk.f32.vlgmr.msra.gmra.mrb[2].mxu0 %vm187_vm2, %v340_v22  ;;  %2542 = vmatprep.subr.mxu0 %v2945_v1  ;;  %v843_v22 = vld [vmem:[#allocation9 + $0x30] sm:$0xff] }
 0x287   :  { %2544 = vmatprep.mubr.msk.f32.mxu0 %vm2944_vm0, %v2945_v1  ;;  %2599 = vmatpush3.bf16.msra.mxu1 %v2598_v29 }
 0x288   :  { %2552 = vmatprep.subr.mxu1 %v2945_v1 }
 0x355   :  { %v330_v30 = vpop.f32.mrb[2].mxu1 }
 0x356   :  { %v331_v31 = vadd.f32 %v330_v30, %v257_v15  ;;  %v2525_v32 = vpop.f32.mrb[3].mxu1  ;;  %v997_v30 = vld [vmem:[#allocation9 + $0x40] sm:$0xff] }
 0x357   :  { %v2616_v32 = vpack.c.bf16 %v1090_v28, %v1088_v27  ;;  %v2455_v27 = vld [vmem:[%s3267_s7 + $0x18] sm:$0xff] }
 0x358   :  { %v1455_v28 = vld [vmem:[#allocation8 + $0x18] sm:$0xff] }
 0x359   :  { %v410_v33 = vpop.f32.mrb[2].mxu0 }
 0x35a   :  { %v414_v35 = vadd.f32 %v410_v33, %v331_v31  ;;  %v2530_v36 = vpop.f32.mrb[3].mxu0  ;;  %v2614_v31 = vpack.c.bf16 %v1085_v26, %v1083_v25  ;;  %v1087_v33 = vld [vmem:[#allocation6 + $0x20] sm:$0xff]  ;;  %v1199_v26 = vld [vmem:[#allocation9 + $0x50] sm:$0xff] }
 0x35b   :  { %v1094_v36 = vld [vmem:[#allocation6 + $0x58] sm:$0xff] }
 0x35c   :  { %v421_v37 = vadd.f32 %v419_v34, %v414_v35  ;;  %v1089_v34 = vld [vmem:[#allocation6 + $0x30] sm:$0xff]  ;;  %v1092_v35 = vld [vmem:[#allocation6 + $0x48] sm:$0xff] }
 0x35e   :  { %vm422_vm7 = vcmp.gt.f32.partialorder %v421_v37, 0.0  ;;  %v423_v38 = vmul.f32 0.01, %v421_v37 }
 0x360   :  { %v424_v39 = vsel %vm422_vm7, %v421_v37, %v423_v38  ;;  %v2618_v37 = vpack.c.bf16 %v1089_v34, %v1087_v33  ;;  %v2620_v38 = vpack.c.bf16 %v1094_v36, %v1092_v35  ;;  %v1463_v34 = vld [vmem:[#allocation8 + $0x58] sm:$0xff] }
 0x361   :  { %2540 = vmatmul.mubr.msk.f32.vlgmr.msra.gmra.mrb[4].mxu1 %vm429_vm8, %v424_v39  ;;  %v1091_v39 = vld [vmem:[#allocation6 + $0x40] sm:$0xff]  ;;  %v1467_v35 = vld [vmem:[#allocation8 + $0x78] sm:$0xff] }
 0x362   :  { %2554 = vmatprep.mubr.msk.f32.mxu1 %vm2944_vm0, %v2945_v1  ;;  %v2712_v36 = vpack.c.bf16 %v1467_v35, %v1463_v34  ;;  %v1547_v34 = vld [vmem:[#allocation8 + $0x2f8] sm:$0xff] }
 0x434   :  { %v499_v40 = vpop.f32.mrb[4].mxu1 }
 0x435   :  { %504 = vrot.lane.b32.xlu1 %v499_v40, %s2949_s2  ;;  %v2541_v41 = vpop.f32.mrb[5].mxu1  ;;  %2543 = vmatpush3.msra.mxu0 %v499_v40 }
 0x436   :  { %2547 = vmatprep.subr.mxu0 %v2945_v1  ;;  %2545 = vmatmul.mubr.msk.f32.vlgmr.msra.gmra.mrb[4].mxu0 %vm187_vm2, %v518_v42  ;;  %v1096_v41 = vld [vmem:[#allocation6 + $0x68] sm:$0xff]  ;;  %v1098_v42 = vld [vmem:[#allocation6 + $0x78] sm:$0xff] }
 0x437   :  { %2549 = vmatprep.mubr.msk.f32.mxu0 %vm2944_vm0, %v2945_v1 }
 0x4a7   :  { %v505_v43 = vpop.permute.xlu1 %504 }
 0x4a8   :  { %v506_v44 = vsel %vm503_vm9, %v505_v43, %v499_v40 }
 0x4a9   :  { %507 = vrot.lane.b32.xlu1 %v506_v44, %s2949_s2  ;;  %v2624_v44 = vpack.c.bf16 %v1098_v42, %v1096_v41  ;;  %v1475_v41 = vld [vmem:[#allocation8 + $0xb8] sm:$0xff] }
 0x509   :  { %v588_v48 = vpop.f32.mrb[4].mxu0 }
 0x50a   :  { %v2546_v49 = vpop.f32.mrb[5].mxu0 }
 0x51b   :  { %v508_v45 = vpop.permute.xlu1 %507 }
 0x51c   :  { %v509_v46 = vsel %vm503_vm9, %v508_v45, %v499_v40  ;;  %v1093_v40 = vld [vmem:[#allocation6 + $0x50] sm:$0xff]  ;;  %v1095_v45 = vld [vmem:[#allocation6 + $0x60] sm:$0xff] }
 0x51d   :  { %666 = vrot.lane.b32.xlu1 %v509_v46, %s2948_s30  ;;  %511 = vrot.lane.b32.xlu0 %v509_v46, %s2950_s18  ;;  %v2622_v43 = vpack.c.bf16 %v1093_v40, %v1091_v39  ;;  %v1097_v46 = vld [vmem:[#allocation6 + $0x70] sm:$0xff]  ;;  %v1471_v40 = vld [vmem:[#allocation8 + $0x98] sm:$0xff] }
 0x51e   :  { %v2626_v49 = vpack.c.bf16 %v1097_v46, %v1095_v45  ;;  %v2716_v42 = vpack.c.bf16 %v1475_v41, %v1471_v40  ;;  %v1479_v45 = vld [vmem:[#allocation8 + $0xd8] sm:$0xff] }
 0x51f   :  { %v1555_v40 = vld [vmem:[#allocation8 + $0x338] sm:$0xff] }
 0x521   :  { %750 = vperm.xlu0 %2805, %v2438_v47   ;;  %v1100_v47 = vld [vmem:[#allocation6 + $0x88] sm:$0xff] }
 0x58f   :  { %v667_v54 = vpop.permute.xlu1 %666  ;;  %v512_v55 = vpop.permute.xlu0 %511 }
 0x590   :  { %2548 = vmatpush3.msk.msra.mxu0 %vm3098_vm5, %v512_v55  ;;  %2553 = vmatpush3.msk.msra.mxu1 %vm2470_vm10, %v667_v54  ;;  %v1104_v54 = vld [vmem:[#allocation6 + $0xa8] sm:$0xff]  ;;  %v1106_v55 = vld [vmem:[#allocation6 + $0xb8] sm:$0xff] }
 0x591   :  { %2550 = vmatmul.mubr.msk.f32.vlgmr.msra.gmra.mrb[6].mxu0 %vm187_vm2, %v516_v52  ;;  %2555 = vmatmul.mubr.msk.f32.vlgmr.msra.gmra.mrb[6].mxu1 %vm187_vm2, %v671_v53  ;;  %v1101_v52 = vld [vmem:[#allocation6 + $0x90] sm:$0xff] }
 0x592   :  { %2600 = vmatprep.subr.bf16.mxu0 %v2943_v0  ;;  %2573 = vmatprep.mubr.msk.f32.mxu0 %vm2944_vm0, %v2945_v1  ;;  %v2630_v53 = vpack.c.bf16 %v1101_v52, %v1099_v51  ;;  %v1487_v51 = vld [vmem:[#allocation8 + $0x118] sm:$0xff] }
 0x593   :  { %2602 = vmatpush3.bf16.msra.mxu0 %v2601_v56  ;;  %2576 = vmatprep.subr.mxu1 %v2945_v1  ;;  %v2632_v56 = vpack.c.bf16 %v1106_v55, %v1104_v54  ;;  %v1491_v52 = vld [vmem:[#allocation8 + $0x138] sm:$0xff]  ;;  %v1486_v55 = vld [vmem:[#allocation8 + $0x110] sm:$0xff] }
 0x594   :  { %2603 = vmatprep.subr.bf16.mxu0 %v2943_v0  ;;  %2578 = vmatprep.mubr.msk.f32.mxu1 %vm2944_vm0, %v2945_v1  ;;  %v2724_v54 = vpack.c.bf16 %v1491_v52, %v1487_v51 }
 0x597   :  { %2605 = vmatpush3.bf16.msra.mxu0 %v2604_v59  ;;  %v2634_v59 = vpack.c.bf16 %v1105_v58, %v1103_v57  ;;  %v1495_v57 = vld [vmem:[#allocation8 + $0x158] sm:$0xff] }
 0x598   :  { %2606 = vmatprep.subr.bf16.mxu0 %v2943_v0  ;;  %v1499_v58 = vld [vmem:[#allocation8 + $0x178] sm:$0xff] }
 0x59b   :  { %2608 = vmatpush3.bf16.msra.mxu0 %v2607_v62  ;;  %v2636_v62 = vpack.c.bf16 %v1110_v61, %v1108_v60  ;;  %v2728_v60 = vpack.c.bf16 %v1499_v58, %v1495_v57  ;;  %v1494_v61 = vld [vmem:[#allocation8 + $0x150] sm:$0xff]  ;;  %v1197_v57 = vld [vmem:[#allocation9 + $0x48] sm:$0xff] }
 0x59c   :  { %2609 = vmatprep.subr.bf16.mxu0 %v2943_v0  ;;  %v1453_v58 = vld [vmem:[#allocation8 + $0x8] sm:$0xff] }
 0x59f   :  { %2611 = vmatpush3.bf16.msra.mxu0 %v2610_v3  ;;  %v2638_v3 = vpack.c.bf16 %v1109_v2, %v1107_v63  ;;  %v1503_v63 = vld [vmem:[#allocation8 + $0x198] sm:$0xff] }
 0x5a0   :  { %v751_v10 = vpop.permute.xlu0 %750  ;;  %v1507_v2 = vld [vmem:[#allocation8 + $0x1b8] sm:$0xff] }
 0x664   :  { %v661_v4 = vpop.f32.mrb[6].mxu0  ;;  %v741_v5 = vpop.f32.mrb[6].mxu1 }
 0x665   :  { %v662_v6 = vadd.f32 %v661_v4, %v588_v48  ;;  %v2551_v7 = vpop.f32.mrb[7].mxu0  ;;  %v2556_v8 = vpop.f32.mrb[7].mxu1  ;;  %v1102_v48 = vld [vmem:[#allocation6 + $0x98] sm:$0xff]  ;;  %v1112_v4 = vld [vmem:[#allocation6 + $0xe8] sm:$0xff] }
 0x666   :  { %v2628_v50 = vpack.c.bf16 %v1102_v48, %v1100_v47  ;;  %v1111_v7 = vld [vmem:[#allocation6 + $0xe0] sm:$0xff]  ;;  %v1113_v8 = vld [vmem:[#allocation6 + $0xf0] sm:$0xff]  ;;  %v1483_v47 = vld [vmem:[#allocation8 + $0xf8] sm:$0xff] }
 0x667   :  { %v745_v9 = vadd.f32 %v741_v5, %v662_v6  ;;  %v1114_v5 = vld [vmem:[#allocation6 + $0xf8] sm:$0xff]  ;;  %v2720_v48 = vpack.c.bf16 %v1483_v47, %v1479_v45 }
 0x668   :  { %v2640_v6 = vpack.c.bf16 %v1114_v5, %v1112_v4  ;;  %v2732_v4 = vpack.c.bf16 %v1507_v2, %v1503_v63  ;;  %v1502_v5 = vld [vmem:[#allocation8 + $0x190] sm:$0xff]  ;;  %v1559_v45 = vld [vmem:[#allocation8 + $0x358] sm:$0xff] }
 0x669   :  { %v753_v11 = vadd.f32 %v751_v10, %v745_v9  ;;  %v2642_v9 = vpack.c.bf16 %v1113_v8, %v1111_v7  ;;  %v1511_v7 = vld [vmem:[#allocation8 + $0x1d8] sm:$0xff] }
 0x66a   :  { %v1515_v8 = vld [vmem:[#allocation8 + $0x1f8] sm:$0xff] }
 0x66b   :  { %vm754_vm11 = vcmp.gt.f32.partialorder %v753_v11, 0.0  ;;  %v755_v12 = vmul.f32 0.01, %v753_v11 }
 0x66d   :  { %v756_v13 = vsel %vm754_vm11, %v753_v11, %v755_v12 }
 0x66e   :  { %2574 = vmatmul.mubr.msk.f32.vlgmr.msra.gmra.mrb[8].mxu0 %vm765_vm12, %v756_v13 }
 0x66f   :  { %1267 = vmatprep.mubr.f32.mxu0 %v2945_v1 }
 0x741   :  { %v835_v0 = vpop.f32.mrb[8].mxu0 }
 0x742   :  { %993 = vrot.lane.b32.xlu0 %v835_v0, %s2948_s30  ;;  %839 = vrot.lane.b32.xlu1 %v835_v0, %s2951_s22  ;;  %v2575_v15 = vpop.f32.mrb[9].mxu0 }
 0x743   :  { %2577 = vmatpush3.msra.mxu1 %v835_v0 }
 0x744   :  { %2579 = vmatmul.mubr.msk.f32.vlgmr.msra.gmra.mrb[8].mxu1 %vm187_vm2, %v845_v14  ;;  %2581 = vmatprep.subr.mxu1 %v2945_v1 }
 0x745   :  { %2583 = vmatprep.mubr.msk.f32.mxu1 %vm2944_vm0, %v2945_v1 }
 0x746   :  { %1076 = vperm.xlu1 %2806, %v2447_v16  }
 0x7b4   :  { %v840_v23 = vpop.permute.xlu1 %839  ;;  %v994_v29 = vpop.permute.xlu0 %993 }
 0x7b5   :  { %2582 = vmatpush3.msk.msra.mxu1 %vm3098_vm5, %v840_v23 }
 0x7b6   :  { %2584 = vmatmul.mubr.msk.f32.vlgmr.msra.gmra.mrb[10].mxu1 %vm187_vm2, %v843_v22  ;;  %2586 = vmatprep.subr.mxu1 %v2945_v1 }
 0x7b7   :  { %2587 = vmatpush3.msk.msra.mxu1 %vm2471_vm13, %v994_v29  ;;  %2588 = vmatprep.mubr.msk.f32.mxu1 %vm2944_vm0, %v2945_v1  ;;  %v1459_v29 = vld [vmem:[#allocation8 + $0x38] sm:$0xff] }
 0x7b8   :  { %2613 = vmatprep.subr.bf16.mxu1 %v2612_v24 }
 0x7ba   :  { %2589 = vmatmul.mubr.msk.f32.vlgmr.msra.gmra.mrb[12].mxu1 %vm187_vm2, %v997_v30  ;;  %v2708_v30 = vpack.c.bf16 %v1459_v29, %v1455_v28  ;;  %v1539_v28 = vld [vmem:[#allocation8 + $0x2b8] sm:$0xff] }
 0x7bb   :  { %2615 = vmatpush1.bf16.msra.mxu1 %v2614_v31  ;;  %1179 = vmatprep.mubr.f32.mxu1 %v2945_v1  ;;  %v1454_v31 = vld [vmem:[#allocation8 + $0x10] sm:$0xff] }
 0x7bc   :  { %2617 = vmatprep.subr.bf16.mxu1 %v2616_v32  ;;  %v1458_v32 = vld [vmem:[#allocation8 + $0x30] sm:$0xff] }
 0x7bd   :  { %v2710_v33 = vpack.c.bf16 %v1458_v32, %v1454_v31  ;;  %v1534_v31 = vld [vmem:[#allocation8 + $0x290] sm:$0xff] }
 0x7be   :  { %v1538_v32 = vld [vmem:[#allocation8 + $0x2b0] sm:$0xff] }
 0x7bf   :  { %2619 = vmatpush1.bf16.msra.mxu1 %v2618_v37  ;;  %v1462_v37 = vld [vmem:[#allocation8 + $0x50] sm:$0xff]  ;;  %v2750_v35 = vpack.c.bf16 %v1538_v32, %v1534_v31  ;;  %v1488_v31 = vld [vmem:[#allocation8 + $0x120] sm:$0xff]  ;;  %v1493_v32 = vld [vmem:[#allocation8 + $0x148] sm:$0xff] }
 0x7c0   :  { %2621 = vmatprep.subr.bf16.mxu1 %v2620_v38  ;;  %v1466_v38 = vld [vmem:[#allocation8 + $0x70] sm:$0xff] }
 0x7c1   :  { %v2714_v39 = vpack.c.bf16 %v1466_v38, %v1462_v37  ;;  %v1542_v37 = vld [vmem:[#allocation8 + $0x2d0] sm:$0xff] }
 0x7c2   :  { %v1546_v38 = vld [vmem:[#allocation8 + $0x2f0] sm:$0xff] }
 0x7c3   :  { %2623 = vmatpush1.bf16.msra.mxu1 %v2622_v43  ;;  %v1470_v43 = vld [vmem:[#allocation8 + $0x90] sm:$0xff]  ;;  %v2754_v41 = vpack.c.bf16 %v1546_v38, %v1542_v37  ;;  %v1496_v37 = vld [vmem:[#allocation8 + $0x160] sm:$0xff]  ;;  %v1501_v38 = vld [vmem:[#allocation8 + $0x188] sm:$0xff] }
 0x7c4   :  { %2625 = vmatprep.subr.bf16.mxu1 %v2624_v44  ;;  %v1474_v44 = vld [vmem:[#allocation8 + $0xb0] sm:$0xff] }
 0x7c5   :  { %v1077_v15 = vpop.permute.xlu1 %1076  ;;  %v2718_v46 = vpack.c.bf16 %v1474_v44, %v1470_v43  ;;  %v1550_v43 = vld [vmem:[#allocation8 + $0x310] sm:$0xff] }
 0x7c6   :  { %v1554_v44 = vld [vmem:[#allocation8 + $0x330] sm:$0xff] }
 0x7c7   :  { %2627 = vmatpush1.bf16.msra.mxu1 %v2626_v49  ;;  %v1478_v49 = vld [vmem:[#allocation8 + $0xd0] sm:$0xff]  ;;  %v2758_v47 = vpack.c.bf16 %v1554_v44, %v1550_v43  ;;  %v1504_v43 = vld [vmem:[#allocation8 + $0x1a0] sm:$0xff]  ;;  %v1509_v44 = vld [vmem:[#allocation8 + $0x1c8] sm:$0xff] }
 0x7c8   :  { %2629 = vmatprep.subr.bf16.mxu1 %v2628_v50  ;;  %v1482_v50 = vld [vmem:[#allocation8 + $0xf0] sm:$0xff] }
 0x7cb   :  { %2631 = vmatpush1.bf16.msra.mxu1 %v2630_v53  ;;  %v2722_v53 = vpack.c.bf16 %v1482_v50, %v1478_v49  ;;  %v1558_v49 = vld [vmem:[#allocation8 + $0x350] sm:$0xff] }
 0x7cc   :  { %2633 = vmatprep.subr.bf16.mxu1 %v2632_v56  ;;  %v1490_v56 = vld [vmem:[#allocation8 + $0x130] sm:$0xff] }
 0x7cd   :  { %v1562_v50 = vld [vmem:[#allocation8 + $0x370] sm:$0xff] }
 0x7ce   :  { %v2762_v51 = vpack.c.bf16 %v1562_v50, %v1558_v49  ;;  %v1512_v49 = vld [vmem:[#allocation8 + $0x1e0] sm:$0xff]  ;;  %v1517_v50 = vld [vmem:[#allocation8 + $0x208] sm:$0xff] }
 0x7cf   :  { %2635 = vmatpush1.bf16.msra.mxu1 %v2634_v59  ;;  %v2726_v59 = vpack.c.bf16 %v1490_v56, %v1486_v55 }
 0x7d0   :  { %2637 = vmatprep.subr.bf16.mxu1 %v2636_v62  ;;  %v1498_v62 = vld [vmem:[#allocation8 + $0x170] sm:$0xff] }
 0x7d3   :  { %2639 = vmatpush1.bf16.msra.mxu1 %v2638_v3  ;;  %v2730_v3 = vpack.c.bf16 %v1498_v62, %v1494_v61 }
 0x7d4   :  { %2641 = vmatprep.subr.bf16.mxu1 %v2640_v6  ;;  %v1506_v6 = vld [vmem:[#allocation8 + $0x1b0] sm:$0xff] }
 0x7d7   :  { %2643 = vmatpush1.bf16.msra.mxu1 %v2642_v9  ;;  %v2734_v9 = vpack.c.bf16 %v1506_v6, %v1502_v5  ;;  %v1461_v5 = vld [vmem:[#allocation8 + $0x48] sm:$0xff] }
 0x7d8   :  { %2709 = vmatprep.subr.bf16.mxu1 %v2708_v30  ;;  %v1465_v6 = vld [vmem:[#allocation8 + $0x68] sm:$0xff] }
 0x817   :  { %v915_v10 = vpop.f32.mrb[8].mxu1 }
 0x818   :  { %v2580_v11 = vpop.f32.mrb[9].mxu1 }
 0x819   :  { %v1510_v11 = vld [vmem:[#allocation8 + $0x1d0] sm:$0xff] }
 0x889   :  { %v988_v12 = vpop.f32.mrb[10].mxu1 }
 0x88a   :  { %v989_v13 = vadd.f32 %v988_v12, %v915_v10  ;;  %v2585_v0 = vpop.f32.mrb[11].mxu1  ;;  %v2736_v10 = vpack.c.bf16 %v1515_v8, %v1511_v7  ;;  %v1514_v12 = vld [vmem:[#allocation8 + $0x1f0] sm:$0xff]  ;;  %v1360_v7 = vld [vmem:[#allocation9 + $0x58] sm:$0xff] }
 0x88b   :  { %v1523_v0 = vld [vmem:[#allocation8 + $0x238] sm:$0xff] }
 0x88d   :  { %v1067_v14 = vpop.f32.mrb[12].mxu1 }
 0x88e   :  { %v1071_v16 = vadd.f32 %v1067_v14, %v989_v13  ;;  %v2590_v20 = vpop.f32.mrb[13].mxu1  ;;  %v1519_v13 = vld [vmem:[#allocation8 + $0x218] sm:$0xff]  ;;  %v2738_v14 = vpack.c.bf16 %v1514_v12, %v1510_v11  ;;  %v1464_v11 = vld [vmem:[#allocation8 + $0x60] sm:$0xff]  ;;  %v1469_v12 = vld [vmem:[#allocation8 + $0x88] sm:$0xff] }
 0x88f   :  { %v1522_v20 = vld [vmem:[#allocation8 + $0x230] sm:$0xff] }
 0x890   :  { %v1079_v21 = vadd.f32 %v1077_v15, %v1071_v16  ;;  %v2740_v15 = vpack.c.bf16 %v1523_v0, %v1519_v13  ;;  %v1518_v16 = vld [vmem:[#allocation8 + $0x210] sm:$0xff]  ;;  %v1473_v13 = vld [vmem:[#allocation8 + $0xa8] sm:$0xff] }
 0x892   :  { %vm1080_vm14 = vcmp.gt.f32.partialorder %v1079_v21, 0.0  ;;  %v1081_v22 = vmul.f32 0.01, %v1079_v21 }
 0x894   :  { %v1082_v23 = vsel %vm1080_vm14, %v1079_v21, %v1081_v22  ;;  %v1527_v21 = vld [vmem:[#allocation8 + $0x258] sm:$0xff] }
 0x895   :  { %1180 = vmatmul.mubr.f32.vlgmr.msra.gmra.mrb[14].mxu1 %v1082_v23  ;;  %v1531_v22 = vld [vmem:[#allocation8 + $0x278] sm:$0xff]  ;;  %v2742_v23 = vpack.c.bf16 %v1522_v20, %v1518_v16  ;;  %v1472_v16 = vld [vmem:[#allocation8 + $0xa0] sm:$0xff]  ;;  %v1477_v20 = vld [vmem:[#allocation8 + $0xc8] sm:$0xff] }
 0x896   :  { %2711 = vmatpush1.bf16.msra.mxu1 %v2710_v33  ;;  %v1543_v33 = vld [vmem:[#allocation8 + $0x2d8] sm:$0xff] }
 0x897   :  { %2713 = vmatprep.subr.bf16.mxu1 %v2712_v36  ;;  %v2752_v36 = vpack.c.bf16 %v1547_v34, %v1543_v33  ;;  %v1497_v33 = vld [vmem:[#allocation8 + $0x168] sm:$0xff] }
 0x89a   :  { %2715 = vmatpush1.bf16.msra.mxu1 %v2714_v39  ;;  %v1551_v39 = vld [vmem:[#allocation8 + $0x318] sm:$0xff] }
 0x89b   :  { %2717 = vmatprep.subr.bf16.mxu1 %v2716_v42  ;;  %v2756_v42 = vpack.c.bf16 %v1555_v40, %v1551_v39  ;;  %v1505_v39 = vld [vmem:[#allocation8 + $0x1a8] sm:$0xff] }
 0x89e   :  { %2719 = vmatpush1.bf16.msra.mxu1 %v2718_v46  ;;  %v1563_v46 = vld [vmem:[#allocation8 + $0x378] sm:$0xff] }
 0x89f   :  { %2721 = vmatprep.subr.bf16.mxu1 %v2720_v48  ;;  %v2760_v48 = vpack.c.bf16 %v1563_v46, %v1559_v45  ;;  %v1513_v45 = vld [vmem:[#allocation8 + $0x1e8] sm:$0xff] }
 0x8a2   :  { %2723 = vmatpush1.bf16.msra.mxu1 %v2722_v53  ;;  %v1186_v53 = vadd.s32 128, %v3093_v18 }
 0x8a3   :  { %2725 = vmatprep.subr.bf16.mxu1 %v2724_v54 }
 0x8a4   :  { %vm2472_vm15 = vcmp.lt.s32.totalorder %v1186_v53, 255 }
 0x8a6   :  { %2727 = vmatpush1.bf16.msra.mxu1 %v2726_v59  ;;  %v1457_v59 = vld [vmem:[#allocation8 + $0x28] sm:$0xff] }
 0x8a7   :  { %2729 = vmatprep.subr.bf16.mxu1 %v2728_v60  ;;  %v2644_v62 = vpack.c.bf16 %v1457_v59, %v1453_v58 }
 0x8aa   :  { %2731 = vmatpush1.bf16.msra.mxu1 %v2730_v3  ;;  %v1452_v3 = vld [vmem:[#allocation8] sm:$0xff] }
 0x8ab   :  { %2733 = vmatprep.subr.bf16.mxu1 %v2732_v4  ;;  %v1456_v4 = vld [vmem:[#allocation8 + $0x20] sm:$0xff] }
 0x8ac   :  { %v2646_v8 = vpack.c.bf16 %v1456_v4, %v1452_v3  ;;  %v1532_v4 = vld [vmem:[#allocation8 + $0x280] sm:$0xff] }
 0x8ae   :  { %2735 = vmatpush1.bf16.msra.mxu1 %v2734_v9  ;;  %v2648_v9 = vpack.c.bf16 %v1465_v6, %v1461_v5  ;;  %v1536_v5 = vld [vmem:[#allocation8 + $0x2a0] sm:$0xff]  ;;  %v1541_v6 = vld [vmem:[#allocation8 + $0x2c8] sm:$0xff] }
 0x8af   :  { %2737 = vmatprep.subr.bf16.mxu1 %v2736_v10  ;;  %v1460_v10 = vld [vmem:[#allocation8 + $0x40] sm:$0xff] }
 0x8b0   :  { %v2650_v0 = vpack.c.bf16 %v1464_v11, %v1460_v10  ;;  %v1540_v10 = vld [vmem:[#allocation8 + $0x2c0] sm:$0xff] }
 0x8b1   :  { %v1544_v11 = vld [vmem:[#allocation8 + $0x2e0] sm:$0xff] }
 0x8b2   :  { %2739 = vmatpush1.bf16.msra.mxu1 %v2738_v14  ;;  %v2652_v14 = vpack.c.bf16 %v1473_v13, %v1469_v12  ;;  %v1549_v12 = vld [vmem:[#allocation8 + $0x308] sm:$0xff] }
 0x8b3   :  { %2741 = vmatprep.subr.bf16.mxu1 %v2740_v15  ;;  %v1468_v15 = vld [vmem:[#allocation8 + $0x80] sm:$0xff]  ;;  %v1553_v13 = vld [vmem:[#allocation8 + $0x328] sm:$0xff] }
 0x8b6   :  { %2743 = vmatpush1.bf16.msra.mxu1 %v2742_v23 }
 0x968   :  { %v1181_v24 = vpop.f32.mrb[14].mxu1 }
 0x969   :  { %1188 = vrot.lane.b32.xlu0 %v1181_v24, %s2951_s22  ;;  %v1183_v25 = vpop.f32.mrb[15].mxu1 }
 0x96a   :  { %1190 = vrot.lane.b32.xlu1 %v1183_v25, %s2951_s22  ;;  %1203 = vmatprep.subr.mxu0 %v1183_v25 }
 0x96b   :  { %1204 = vmatpush1.msra.mxu0 %v1181_v24 }
 0x96c   :  { %2448 = vmatmul.mubr.msk.f32.vlgmr.msra.gmra.mrb[10].mxu0 %vm187_vm2, %v1199_v26  ;;  %v1530_v26 = vld [vmem:[#allocation8 + $0x270] sm:$0xff] }
 0x96d   :  { %1350 = vrot.lane.b32.xlu0 %v1181_v24, %s2948_s30  ;;  %1341 = vmatprep.mubr.f32.mxu0 %v2945_v1  ;;  %v2744_v24 = vpack.c.bf16 %v1531_v22, %v1527_v21  ;;  %v1481_v21 = vld [vmem:[#allocation8 + $0xe8] sm:$0xff]  ;;  %v2654_v22 = vpack.c.bf16 %v1472_v16, %v1468_v15  ;;  %v1548_v15 = vld [vmem:[#allocation8 + $0x300] sm:$0xff] }
 0x96e   :  { %1352 = vrot.lane.b32.xlu1 %v1183_v25, %s2948_s30  ;;  %v1526_v25 = vld [vmem:[#allocation8 + $0x250] sm:$0xff]  ;;  %v2656_v23 = vpack.c.bf16 %v1481_v21, %v1477_v20  ;;  %v1552_v16 = vld [vmem:[#allocation8 + $0x320] sm:$0xff]  ;;  %v1557_v20 = vld [vmem:[#allocation8 + $0x348] sm:$0xff] }
 0x96f   :  { %v2746_v29 = vpack.c.bf16 %v1530_v26, %v1526_v25  ;;  %2745 = vmatprep.subr.bf16.mxu1 %v2744_v24  ;;  %v1476_v24 = vld [vmem:[#allocation8 + $0xc0] sm:$0xff]  ;;  %v1485_v26 = vld [vmem:[#allocation8 + $0x108] sm:$0xff] }
 0x970   :  { %v1480_v25 = vld [vmem:[#allocation8 + $0xe0] sm:$0xff]  ;;  %v1561_v21 = vld [vmem:[#allocation8 + $0x368] sm:$0xff] }
 0x971   :  { %1441 = vperm.xlu0 %2805, %v2455_v27   ;;  %v1535_v27 = vld [vmem:[#allocation8 + $0x298] sm:$0xff]  ;;  %2747 = vmatpush1.bf16.msra.mxu1 %v2746_v29 }
 0x972   :  { %v2748_v30 = vpack.c.bf16 %v1539_v28, %v1535_v27  ;;  %v1489_v27 = vld [vmem:[#allocation8 + $0x128] sm:$0xff]  ;;  %v2658_v28 = vpack.c.bf16 %v1480_v25, %v1476_v24  ;;  %v1556_v24 = vld [vmem:[#allocation8 + $0x340] sm:$0xff] }
 0x973   :  { %v2660_v29 = vpack.c.bf16 %v1489_v27, %v1485_v26  ;;  %v1560_v25 = vld [vmem:[#allocation8 + $0x360] sm:$0xff]  ;;  %v1565_v27 = vld [vmem:[#allocation8 + $0x388] sm:$0xff] }
 0x974   :  { %2749 = vmatprep.subr.bf16.mxu1 %v2748_v30  ;;  %v1484_v30 = vld [vmem:[#allocation8 + $0x100] sm:$0xff]  ;;  %v2698_v26 = vpack.c.bf16 %v1560_v25, %v1556_v24 }
 0x975   :  { %2751 = vmatpush1.bf16.msra.mxu1 %v2750_v35  ;;  %v2662_v34 = vpack.c.bf16 %v1488_v31, %v1484_v30  ;;  %v2664_v35 = vpack.c.bf16 %v1497_v33, %v1493_v32  ;;  %v1571_v31 = vld [vmem:[#allocation8 + $0x3b8] sm:$0xff]  ;;  %v1564_v32 = vld [vmem:[#allocation8 + $0x380] sm:$0xff] }
 0x976   :  { %2753 = vmatprep.subr.bf16.mxu1 %v2752_v36  ;;  %v1492_v36 = vld [vmem:[#allocation8 + $0x140] sm:$0xff] }
 0x977   :  { %v2666_v40 = vpack.c.bf16 %v1496_v37, %v1492_v36  ;;  %v1568_v33 = vld [vmem:[#allocation8 + $0x3a0] sm:$0xff]  ;;  %v1566_v36 = vld [vmem:[#allocation8 + $0x390] sm:$0xff] }
 0x978   :  { %v1570_v37 = vld [vmem:[#allocation8 + $0x3b0] sm:$0xff] }
 0x979   :  { %2755 = vmatpush1.bf16.msra.mxu1 %v2754_v41  ;;  %v2668_v41 = vpack.c.bf16 %v1505_v39, %v1501_v38  ;;  %v2766_v38 = vpack.c.bf16 %v1570_v37, %v1566_v36  ;;  %v1573_v39 = vld [vmem:[#allocation8 + $0x3c8] sm:$0xff] }
 0x97a   :  { %2757 = vmatprep.subr.bf16.mxu1 %v2756_v42  ;;  %v1500_v42 = vld [vmem:[#allocation8 + $0x180] sm:$0xff] }
 0x97b   :  { %v2670_v46 = vpack.c.bf16 %v1504_v43, %v1500_v42  ;;  %v1579_v43 = vld [vmem:[#allocation8 + $0x3f8] sm:$0xff] }
 0x97d   :  { %2759 = vmatpush1.bf16.msra.mxu1 %v2758_v47  ;;  %v2672_v47 = vpack.c.bf16 %v1513_v45, %v1509_v44  ;;  %v1572_v44 = vld [vmem:[#allocation8 + $0x3c0] sm:$0xff] }
 0x97e   :  { %2761 = vmatprep.subr.bf16.mxu1 %v2760_v48  ;;  %v1508_v48 = vld [vmem:[#allocation8 + $0x1c0] sm:$0xff] }
 0x97f   :  { %v1576_v45 = vld [vmem:[#allocation8 + $0x3e0] sm:$0xff] }
 0x981   :  { %2763 = vmatpush1.bf16.msra.mxu1 %v2762_v51  ;;  %v1521_v51 = vld [vmem:[#allocation8 + $0x228] sm:$0xff] }
 0x982   :  { %v2676_v53 = vpack.c.bf16 %v1521_v51, %v1517_v50 }
 0x9db   :  { %v1189_v52 = vpop.permute.xlu0 %1188 }
 0x9dc   :  { %v1191_v54 = vpop.permute.xlu1 %1190 }
 0x9dd   :  { %v1193_v55 = vsel %vm171_vm4, %v1191_v54, %v1189_v52  ;;  %v1192_v56 = vsel %vm171_vm4, %v1189_v52, %v1191_v54  ;;  %v2674_v52 = vpack.c.bf16 %v1512_v49, %v1508_v48  ;;  %v1516_v54 = vld [vmem:[#allocation8 + $0x200] sm:$0xff]  ;;  %v1574_v48 = vld [vmem:[#allocation8 + $0x3d0] sm:$0xff] }
 0x9de   :  { %1277 = vmatprep.subr.mxu0 %v1192_v56  ;;  %v1525_v56 = vld [vmem:[#allocation8 + $0x248] sm:$0xff]  ;;  %v1578_v49 = vld [vmem:[#allocation8 + $0x3f0] sm:$0xff] }
 0x9df   :  { %v1351_v60 = vpop.permute.xlu0 %1350  ;;  %2450 = vmatpush1.msk.msra.mxu0 %vm3098_vm5, %v1193_v55  ;;  %v1520_v55 = vld [vmem:[#allocation8 + $0x220] sm:$0xff]  ;;  %v2770_v50 = vpack.c.bf16 %v1578_v49, %v1574_v48 }
 0x9e0   :  { %v1353_v61 = vpop.permute.xlu1 %1352  ;;  %2451 = vmatmul.mubr.msk.f32.vlgmr.msra.gmra.mrb[10].mxu0 %vm187_vm2, %v1197_v57  ;;  %v1529_v57 = vld [vmem:[#allocation8 + $0x268] sm:$0xff]  ;;  %v2678_v58 = vpack.c.bf16 %v1520_v55, %v1516_v54 }
 0x9e1   :  { %v1355_v63 = vsel %vm2471_vm13, %v1351_v60, %v1353_v61  ;;  %v1356_v2 = vsel %vm2471_vm13, %v1353_v61, %v1351_v60  ;;  %1428 = vmatprep.mubr.f32.mxu0 %v2945_v1  ;;  %v2680_v59 = vpack.c.bf16 %v1529_v57, %v1525_v56  ;;  %v1524_v60 = vld [vmem:[#allocation8 + $0x240] sm:$0xff] }
 0x9e2   :  { %2453 = vmatprep.subr.msk.mxu0 %vm2472_vm15, %v1356_v2  ;;  %v1528_v61 = vld [vmem:[#allocation8 + $0x260] sm:$0xff] }
 0x9e3   :  { %1365 = vmatpush1.msra.mxu0 %v1355_v63  ;;  %v1537_v63 = vld [vmem:[#allocation8 + $0x2a8] sm:$0xff]  ;;  %v2682_v2 = vpack.c.bf16 %v1528_v61, %v1524_v60 }
 0x9e4   :  { %2645 = vmatprep.subr.bf16.mxu0 %v2644_v62  ;;  %v1533_v62 = vld [vmem:[#allocation8 + $0x288] sm:$0xff] }
 0x9e5   :  { %v2684_v3 = vpack.c.bf16 %v1537_v63, %v1533_v62 }
 0x9e8   :  { %2454 = vmatmul.mubr.msk.f32.vlgmr.msra.gmra.mrb[10].mxu0 %vm187_vm2, %v1360_v7  ;;  %v1545_v7 = vld [vmem:[#allocation8 + $0x2e8] sm:$0xff] }
 0x9e9   :  { %2647 = vmatpush1.bf16.msra.mxu0 %v2646_v8  ;;  %v2686_v8 = vpack.c.bf16 %v1536_v5, %v1532_v4 }
 0x9ea   :  { %2649 = vmatprep.subr.bf16.mxu0 %v2648_v9  ;;  %v2688_v9 = vpack.c.bf16 %v1545_v7, %v1541_v6 }
 0x9ed   :  { %2651 = vmatpush1.bf16.msra.mxu0 %v2650_v0  ;;  %v2690_v0 = vpack.c.bf16 %v1544_v11, %v1540_v10 }
 0x9ee   :  { %2653 = vmatprep.subr.bf16.mxu0 %v2652_v14  ;;  %v2692_v14 = vpack.c.bf16 %v1553_v13, %v1549_v12 }
 0x9f0   :  { %v1442_v51 = vpop.permute.xlu0 %1441 }
 0x9f1   :  { %2655 = vmatpush1.bf16.msra.mxu0 %v2654_v22  ;;  %v2694_v22 = vpack.c.bf16 %v1552_v16, %v1548_v15  ;;  %v2057_v16 = vld [vmem:[#allocation9 + $0x70] sm:$0xff] }
 0x9f2   :  { %2657 = vmatprep.subr.bf16.mxu0 %v2656_v23  ;;  %v2696_v23 = vpack.c.bf16 %v1561_v21, %v1557_v20 }
 0x9f5   :  { %2659 = vmatpush1.bf16.msra.mxu0 %v2658_v28  ;;  %v1569_v28 = vld [vmem:[#allocation8 + $0x3a8] sm:$0xff] }
 0x9f6   :  { %2661 = vmatprep.subr.bf16.mxu0 %v2660_v29  ;;  %v1567_v29 = vld [vmem:[#allocation8 + $0x398] sm:$0xff]  ;;  %v2700_v30 = vpack.c.bf16 %v1569_v28, %v1565_v27 }
 0x9f9   :  { %2663 = vmatpush1.bf16.msra.mxu0 %v2662_v34  ;;  %v2764_v34 = vpack.c.bf16 %v1571_v31, %v1567_v29 }
 0x9fa   :  { %2665 = vmatprep.subr.bf16.mxu0 %v2664_v35  ;;  %v2702_v35 = vpack.c.bf16 %v1568_v33, %v1564_v32 }
 0x9fb   :  { %2765 = vmatprep.subr.bf16.mxu1 %v2764_v34 }
 0x9fc   :  { %2767 = vmatpush1.bf16.msra.mxu1 %v2766_v38 }
 0x9fd   :  { %2667 = vmatpush1.bf16.msra.mxu0 %v2666_v40  ;;  %v1577_v40 = vld [vmem:[#allocation8 + $0x3e8] sm:$0xff] }
 0x9fe   :  { %2669 = vmatprep.subr.bf16.mxu0 %v2668_v41  ;;  %v1575_v41 = vld [vmem:[#allocation8 + $0x3d8] sm:$0xff]  ;;  %v2704_v42 = vpack.c.bf16 %v1577_v40, %v1573_v39 }
 0xa01   :  { %2671 = vmatpush1.bf16.msra.mxu0 %v2670_v46  ;;  %v2768_v46 = vpack.c.bf16 %v1579_v43, %v1575_v41  ;;  %v2232_v41 = vstv %s3269_s9 }
 0xa02   :  { %2673 = vmatprep.subr.bf16.mxu0 %v2672_v47  ;;  %v2706_v47 = vpack.c.bf16 %v1576_v45, %v1572_v44 }
 0xa03   :  { %2769 = vmatprep.subr.bf16.mxu1 %v2768_v46 }
 0xa04   :  { %2771 = vmatpush1.bf16.msra.mxu1 %v2770_v50 }
 0xa05   :  { %2675 = vmatpush1.bf16.msra.mxu0 %v2674_v52 }
 0xa06   :  { %2677 = vmatprep.subr.bf16.mxu0 %v2676_v53 }
 0xa09   :  { %2679 = vmatpush1.bf16.msra.mxu0 %v2678_v58 }
 0xa0a   :  { %2681 = vmatprep.subr.bf16.mxu0 %v2680_v59 }
 0xa0d   :  { %2683 = vmatpush1.bf16.msra.mxu0 %v2682_v2  ;;  %v1745_v2 = vld [vmem:[#allocation9 + $0x68] sm:$0xff] }
 0xa0e   :  { %2685 = vmatprep.subr.bf16.mxu0 %v2684_v3  ;;  %v2466_v3 = vld [vmem:[%s3267_s7 + $0x20] sm:$0xff] }
 0xa11   :  { %2687 = vmatpush1.bf16.msra.mxu0 %v2686_v8  ;;  %v1743_v8 = vld [vmem:[#allocation9 + $0x60] sm:$0xff] }
 0xa12   :  { %2689 = vmatprep.subr.bf16.mxu0 %v2688_v9 }
 0xa15   :  { %2691 = vmatpush1.bf16.msra.mxu0 %v2690_v0  ;;  %v1723_v0 = vadd.s32 384, %v3093_v18 }
 0xa16   :  { %2693 = vmatprep.subr.bf16.mxu0 %v2692_v14 }
 0xa17   :  { %vm2473_vm3 = vcmp.lt.s32.totalorder %v1723_v0, 511 }
 0xa19   :  { %2695 = vmatpush1.bf16.msra.mxu0 %v2694_v22 }
 0xa1a   :  { %2697 = vmatprep.subr.bf16.mxu0 %v2696_v23 }
 0xa1d   :  { %2699 = vmatpush1.bf16.msra.mxu0 %v2698_v26 }
 0xa1e   :  { %2701 = vmatprep.subr.bf16.mxu0 %v2700_v30 }
 0xa21   :  { %2703 = vmatpush1.bf16.msra.mxu0 %v2702_v35  ;;  %v2230_v35 = vld [vmem:[%s3268_s8] sm:$0x3]  ;;  %s2953_s8 = smov [#allocation11]  }
 0xa22   :  { %2705 = vmatprep.subr.bf16.mxu0 %v2704_v42  ;;  %s2411_s9 = sshll.u32 %s2953_s8, 4  ;;  %s2412_s9 = int_to_ptr.vmem [resolvable:$true] %s2411_s9 }
 0xa23   :  { %s2903_s27 = scalar_lea.vmem %s2412_s9, 128  ;;  %p2908_p5 = scmp.lt.s32.totalorder %s2412_s9, %s2412_s9 }
 0xa24   :  { %p2904_p4 = scmp.ne.s32.totalorder %s2412_s9, %s2903_s27  ;;  %p2909_p6 = scmp.lt.s32.totalorder %s2903_s27, %s2903_s27 }
 0xa25   :  { %2707 = vmatpush1.bf16.msra.mxu0 %v2706_v47 }
 0xa26   :  { %p2910_p7 = por %p2909_p6, %p2908_p5 }
 0xa28   :  { %p2911_p8 = pnand %p2910_p7, %p2904_p4 }
 0xabb   :  { %v1430_v52 = vpop.f32.mrb[10].mxu0 }
 0xabc   :  { %v1444_v53 = vadd.f32 %v1442_v51, %v1430_v52  ;;  %v1432_v54 = vpop.f32.mrb[11].mxu0 }
 0xabd   :  { %v1445_v55 = vadd.f32 %v1442_v51, %v1432_v54 }
 0xabe   :  { %v1448_v56 = vmul.f32 0.01, %v1444_v53  ;;  %vm1446_vm0 = vcmp.gt.f32.partialorder %v1444_v53, 0.0 }
 0xabf   :  { %v1449_v57 = vmul.f32 0.01, %v1445_v55  ;;  %vm1447_vm1 = vcmp.gt.f32.partialorder %v1445_v55, 0.0 }
 0xac0   :  { %v1450_v59 = vsel %vm1446_vm0, %v1444_v53, %v1448_v56  ;;  %v2392_v53 = vshrl.u32 %v169_v17, 7 }
 0xac1   :  { %v1451_v58 = vsel %vm1447_vm1, %v1445_v55, %v1449_v57 }
 0xac2   :  { %1644 = vmatprep.mubr.f32.mxu0 %v1451_v58  ;;  %1715 = vmatprep.mubr.f32.mxu1 %v1451_v58 }
 0xac3   :  { %1645 = vmatmul.mubr.f32.vlgmr.msra.gmra.mrb[12].mxu0 %v1450_v59  ;;  %1716 = vmatmul.mubr.f32.vlgmr.msra.gmra.mrb[16].mxu1 %v1450_v59 }
 0xac4   :  { %1813 = vmatprep.mubr.f32.mxu0 %v2945_v1  ;;  %2300 = vmatprep.mubr.f32.mxu1 %v2945_v1 }
 0xb96   :  { %v1646_v60 = vpop.f32.mrb[12].mxu0  ;;  %v1717_v61 = vpop.f32.mrb[16].mxu1 }
 0xb97   :  { %v1719_v62 = vpop.f32.mrb[17].mxu1  ;;  %1726 = vrot.lane.b32.xlu1 %v1646_v60, %s2951_s22  ;;  %v1648_v63 = vpop.f32.mrb[13].mxu0 }
 0xb98   :  { %1728 = vrot.lane.b32.xlu0 %v1648_v63, %s2951_s22  ;;  %1749 = vmatprep.subr.mxu0 %v1648_v63 }
 0xb99   :  { %1750 = vmatpush1.msra.mxu0 %v1646_v60 }
 0xb9a   :  { %1820 = vmatprep.subr.mxu0 %v1719_v62  ;;  %2456 = vmatmul.mubr.msk.f32.vlgmr.msra.gmra.mrb[14].mxu0 %vm187_vm2, %v1745_v2 }
 0xb9b   :  { %1732 = vrot.lane.b32.xlu1 %v1719_v62, %s2951_s22  ;;  %1821 = vmatpush1.msra.mxu0 %v1717_v61 }
 0xb9c   :  { %1730 = vrot.lane.b32.xlu0 %v1717_v61, %s2951_s22  ;;  %1884 = vmatprep.mubr.f32.mxu0 %v2945_v1 }
 0xb9e   :  { %2457 = vmatmul.mubr.msk.f32.vlgmr.msra.gmra.mrb[16].mxu0 %vm187_vm2, %v1745_v2 }
 0xb9f   :  { %2042 = vrot.lane.b32.xlu1 %v1648_v63, %s2948_s30  ;;  %1958 = vmatprep.mubr.f32.mxu0 %v2945_v1 }
 0xba0   :  { %2044 = vrot.lane.b32.xlu0 %v1717_v61, %s2948_s30 }
 0xba3   :  { %2040 = vrot.lane.b32.xlu1 %v1646_v60, %s2948_s30 }
 0xba4   :  { %2046 = vrot.lane.b32.xlu0 %v1719_v62, %s2948_s30 }
 0xba7   :  { %2211 = vperm.xlu1 %2806, %v2466_v3  }
 0xc09   :  { %v1727_v4 = vpop.permute.xlu1 %1726 }
 0xc0a   :  { %v1729_v5 = vpop.permute.xlu0 %1728 }
 0xc0b   :  { %v1736_v6 = vsel %vm171_vm4, %v1727_v4, %v1729_v5 }
 0xc0c   :  { %1894 = vmatprep.subr.mxu0 %v1736_v6 }
 0xc0d   :  { %v1733_v7 = vpop.permute.xlu1 %1732 }
 0xc0e   :  { %v1737_v9 = vsel %vm171_vm4, %v1733_v7, %v1727_v4  ;;  %v1731_v10 = vpop.permute.xlu0 %1730 }
 0xc0f   :  { %v1735_v11 = vsel %vm171_vm4, %v1729_v5, %v1731_v10  ;;  %2459 = vmatpush1.msk.msra.mxu0 %vm3098_vm5, %v1737_v9  ;;  %v1734_v12 = vsel %vm171_vm4, %v1731_v10, %v1733_v7 }
 0xc10   :  { %2460 = vmatmul.mubr.msk.f32.vlgmr.msra.gmra.mrb[14].mxu0 %vm187_vm2, %v1743_v8  ;;  %1965 = vmatprep.subr.mxu0 %v1734_v12 }
 0xc11   :  { %v2043_v13 = vpop.permute.xlu1 %2042  ;;  %1966 = vmatpush1.msra.mxu0 %v1735_v11  ;;  %2029 = vmatprep.mubr.f32.mxu0 %v2945_v1 }
 0xc12   :  { %v2045_v14 = vpop.permute.xlu0 %2044 }
 0xc13   :  { %v2049_v15 = vsel %vm2471_vm13, %v2043_v13, %v2045_v14 }
 0xc14   :  { %2461 = vmatmul.mubr.msk.f32.vlgmr.msra.gmra.mrb[16].mxu0 %vm187_vm2, %v1743_v8  ;;  %2061 = vmatprep.subr.mxu0 %v2049_v15 }
 0xc15   :  { %v2041_v19 = vpop.permute.xlu1 %2040  ;;  %2125 = vmatprep.mubr.f32.mxu0 %v2945_v1 }
 0xc16   :  { %v2050_v20 = vsel %vm2471_vm13, %v2041_v19, %v2043_v13  ;;  %v2047_v21 = vpop.permute.xlu0 %2046 }
 0xc17   :  { %v2048_v22 = vsel %vm2471_vm13, %v2045_v14, %v2047_v21  ;;  %v2051_v23 = vsel %vm2471_vm13, %v2047_v21, %v2041_v19  ;;  %2062 = vmatpush1.msra.mxu0 %v2050_v20 }
 0xc18   :  { %2462 = vmatmul.mubr.msk.f32.vlgmr.msra.gmra.mrb[14].mxu0 %vm187_vm2, %v2057_v16  ;;  %2464 = vmatprep.subr.msk.mxu0 %vm2473_vm3, %v2051_v23 }
 0xc19   :  { %2133 = vmatpush1.msra.mxu0 %v2048_v22  ;;  %2196 = vmatprep.mubr.f32.mxu0 %v2945_v1 }
 0xc1c   :  { %2465 = vmatmul.mubr.msk.f32.vlgmr.msra.gmra.mrb[16].mxu0 %vm187_vm2, %v2057_v16 }
 0xc26   :  { %v2212_v24 = vpop.permute.xlu1 %2211 }
 0xceb   :  { %v2127_v25 = vpop.f32.mrb[14].mxu0 }
 0xcec   :  { %v2214_v26 = vadd.f32 %v2212_v24, %v2127_v25  ;;  %v2129_v27 = vpop.f32.mrb[15].mxu0 }
 0xced   :  { %v2215_v28 = vadd.f32 %v2212_v24, %v2129_v27 }
 0xcee   :  { %v2222_v29 = vmul.f32 0.01, %v2214_v26  ;;  %vm2218_vm4 = vcmp.gt.f32.partialorder %v2214_v26, 0.0 }
 0xcef   :  { %v2223_v30 = vmul.f32 0.01, %v2215_v28  ;;  %v2198_v31 = vpop.f32.mrb[16].mxu0  ;;  %vm2219_vm5 = vcmp.gt.f32.partialorder %v2215_v28, 0.0 }
 0xcf0   :  { %v2216_v18 = vadd.f32 %v2212_v24, %v2198_v31  ;;  %v2200_v32 = vpop.f32.mrb[17].mxu0  ;;  %v2226_v37 = vsel %vm2218_vm4, %v2214_v26, %v2222_v29 }
 0xcf1   :  { %v2217_v33 = vadd.f32 %v2212_v24, %v2200_v32  ;;  %v2227_v34 = vsel %vm2219_vm5, %v2215_v28, %v2223_v30 }
 0xcf2   :  { %v2224_v36 = vmul.f32 0.01, %v2216_v18  ;;  %2236 = vmatprep.subr.mxu1 %v2227_v34  ;;  %vm2220_vm6 = vcmp.gt.f32.partialorder %v2216_v18, 0.0 }
 0xcf3   :  { %v2225_v38 = vmul.f32 0.01, %v2217_v33  ;;  %2237 = vmatpush1.msra.mxu1 %v2226_v37  ;;  %vm2221_vm7 = vcmp.gt.f32.partialorder %v2217_v33, 0.0 }
 0xcf4   :  { %2467 = vmatmul.mubr.msk.f32.vlgmr.msra.gmra.mrb[18].mxu1 %vm187_vm2, %v2230_v35  ;;  %v2228_v40 = vsel %vm2220_vm6, %v2216_v18, %v2224_v36 }
 0xcf5   :  { %v2229_v39 = vsel %vm2221_vm7, %v2217_v33, %v2225_v38  ;;  %2371 = vmatprep.mubr.f32.mxu1 %v2945_v1  ;;  %v2952_v1 = vmov 1983009808  }
 0xcf6   :  { %2307 = vmatprep.subr.mxu1 %v2229_v39  ;;  %v2389_v50 = vunpack.c.l.s4 %v2952_v1 }
 0xcf7   :  { %2308 = vmatpush1.msra.mxu1 %v2228_v40 }
 0xcf8   :  { %2468 = vmatmul.mubr.msk.f32.vlgmr.msra.gmra.mrb[20].mxu1 %vm187_vm2, %v2230_v35  ;;  %v2390_v52 = vunpack.c.0.s8 %v2389_v50 }
 0xcfa   :  { %v2393_v57 = vsub.s32 %v2390_v52, %v2392_v53 }
 0xdc7   :  { %v2302_v42 = vpop.f32.mrb[18].mxu1 }
 0xdc8   :  { %v2303_v43 = vadd.f32 %v2302_v42, %v2232_v41  ;;  %v2304_v44 = vpop.f32.mrb[19].mxu1 }
 0xdc9   :  { %v2305_v45 = vadd.f32 %v2304_v44, %v2232_v41 }
 0xdca   :  { %2807 = vtanh.f32 %v2303_v43 }
 0xdcb   :  { %2809 = vtanh.f32 %v2305_v45  ;;  %v2373_v46 = vpop.f32.mrb[20].mxu1 }
 0xdcc   :  { %v2374_v47 = vadd.f32 %v2373_v46, %v2232_v41  ;;  %v2375_v48 = vpop.f32.mrb[21].mxu1 }
 0xdcd   :  { %v2376_v49 = vadd.f32 %v2375_v48, %v2232_v41 }
 0xdce   :  { %2811 = vtanh.f32 %v2374_v47 }
 0xdcf   :  { %2813 = vtanh.f32 %v2376_v49 }
 0xdd4   :  { %v2808_v51 = vpop.eup %2807 }
 0xdd5   :  { %v2810_v54 = vpop.eup %2809 }
 0xdd6   :  { %v2386_v55 = vcombine.low %v2808_v51, %v2810_v54 }
 0xdd8   :  { %v2812_v56 = vpop.eup %2811  ;;  %v2394_v60 = vrot.slane %v2386_v55, %v2393_v57 }
 0xdd9   :  { %v2814_v58 = vpop.eup %2813 }
 0xdda   :  { %v2387_v59 = vcombine.low %v2812_v56, %v2814_v58 }
 0xddc   :  { %v2401_v61 = vrot.slane %v2387_v59, %v2393_v57 }
 0xdde   :  { %v2402_v62 = vcombine.low %v2394_v60, %v2401_v61 }
 0xde0   :  { %2404 = vst [vmem:[#allocation11] sm:$0xff] %v2402_v62 }
 0xde1   :  { %2914 = shalt.err (!%p2911_p8)
}
 0xde2   :  { %s2915_s29 = scalar_lea.hbm %s3270_s10, 128 }
 0xde3   :  { %p2916_p9 = scmp.ne.s32.totalorder %s3270_s10, %s2915_s29  ;;  %p2919_p10 = scmp.lt.u32.totalorder %s2915_s29, %s3270_s10 }
 0xde5   :  { %p2921_p11 = pnand %p2919_p10, %p2916_p9 }
 0xde7   :  { %2924 = shalt.err (!%p2921_p11)
}
 0xde8   :  { %2414 = dma.vmem_to_hbm [thread:$0]  %s2412_s9, 128, %s3270_s10, [#allocation5]  }
 0xde9   :  { %2931 = dma.done.wait [#allocation5], 128  }
 0xdea   :  { %2932 = vsyncadd [#allocation5], 4294967168 }
 0xdeb   :  { %2418 = vsyncpa [#allocation4], 1 }
 0xdec   :  { %2419 = vsyncpa [#allocation7], 1 }
 0xded   :  { %2420 = vsyncpa [#allocation10], 1 }
 0xdee   :  { %2421 = vsyncpa [#allocation5], 1 }

</bundles_post_ra>
